<compile_context>
chip_gen: v6e
topology: v6e:2x2x1
jax: 0.10.0
libtpu: 0.0.40
codegen_flags: <defaults>
</compile_context>

<pallas_src>
import jax
import jax.numpy as jnp
from jax.experimental import pallas as pl
from jax.experimental.pallas import tpu as pltpu


def _sep_block_kernel(x_ref, st_ref,
                      w_ih1_ref, w_hh1_ref, b1_ref,
                      w_ih2_ref, w_hh2_ref, b2_ref,
                      wd_ref, bd_ref,
                      mask_ref, stout_ref,
                      h2_buf):
    """Whole forward pass in one invocation (demo shapes fit VMEM).

    x_ref:    [T*N, F]     time-major, flattened
    st_ref:   [4*N, H]     (h1, c1, h2, c2) stacked along sublanes
    w_ih1:    [F, 4H]   w_hh1: [H, 4H]   b1: [1, 4H]   (gate order i,f,o,g;
                                                        b_ih + b_hh pre-summed)
    w_ih2:    [H, 4H]   w_hh2: [H, 4H]   b2: [1, 4H]
    wd:       [H, F_pad]   bd: [1, F_pad]   (zero-padded to lane multiple)
    mask_ref: [T*N, F_pad]
    stout_ref:[4*N, H]     (aliased with st_ref)
    h2_buf:   [T*N, H]     VMEM scratch collecting per-step h2
    """
    H = w_hh1_ref.shape[0]
    N = st_ref.shape[0] // 4
    T = x_ref.shape[0] // N

    # Hoist weight loads out of the time loop.
    w_hh1 = w_hh1_ref[...]
    w_ih2 = w_ih2_ref[...]
    w_hh2 = w_hh2_ref[...]
    b2 = b2_ref[...]

    # (1) Layer-1 input projection for ALL timesteps in one MXU matmul.
    gin1 = (jnp.dot(x_ref[...], w_ih1_ref[...],
                    preferred_element_type=jnp.float32)
            + b1_ref[...])                                   # [T*N, 4H]

    h1 = st_ref[0 * N:1 * N, :]
    c1 = st_ref[1 * N:2 * N, :]
    h2 = st_ref[2 * N:3 * N, :]
    c2 = st_ref[3 * N:4 * N, :]

    def lstm_gates(gates):
        # Gate order is (i, f, o, g): sigmoid over the first 3H columns,
        # tanh over the last H only (half the transcendental work).
        sg = jax.nn.sigmoid(gates[:, :3 * H])
        g = jnp.tanh(gates[:, 3 * H:])
        i = sg[:, 0 * H:1 * H]
        f = sg[:, 1 * H:2 * H]
        o = sg[:, 2 * H:3 * H]
        return i, f, o, g

    # Static unroll: T is small and known at trace time.
    # TODO(synk): for long production T use lax.fori_loop with carried h/c
    # (bounded live ranges, no register-pressure cliff).
    for t in range(T):
        # Layer 1: only the recurrent matmul is on the serial path.
        gates1 = (gin1[t * N:(t + 1) * N, :]
                  + jnp.dot(h1, w_hh1, preferred_element_type=jnp.float32))
        i1, f1, o1, g1 = lstm_gates(gates1)
        c1 = f1 * c1 + i1 * g1
        h1 = o1 * jnp.tanh(c1)
        # nn.Dropout -> identity at inference.

        # Layer 2: two accumulating dots, no lane concat on the critical path.
        gates2 = (jnp.dot(h1, w_ih2, preferred_element_type=jnp.float32)
                  + jnp.dot(h2, w_hh2, preferred_element_type=jnp.float32)
                  + b2)
        i2, f2, o2, g2 = lstm_gates(gates2)
        c2 = f2 * c2 + i2 * g2
        h2 = o2 * jnp.tanh(c2)

        # Contiguous sublane-block store of this step's h2.
        h2_buf[t * N:(t + 1) * N, :] = h2

    # (2) Deferred Dense + sigmoid: one MXU matmul + one lane-dense store.
    mask_ref[...] = jax.nn.sigmoid(
        jnp.dot(h2_buf[...], wd_ref[...], preferred_element_type=jnp.float32)
        + bd_ref[...]).astype(mask_ref.dtype)

    # Single packed state writeback (one store instead of four partial stores).
    stout_ref[...] = jnp.concatenate([h1, c1, h2, c2], axis=0)


def init_params(key, input_size, hidden_size):
    """PyTorch-style uniform(-1/sqrt(H), 1/sqrt(H)) init, PyTorch weight shapes."""
    bound = 1.0 / float(hidden_size) ** 0.5
    names_shapes = [
        ("rnn1_w_ih", (4 * hidden_size, input_size)),
        ("rnn1_w_hh", (4 * hidden_size, hidden_size)),
        ("rnn1_b_ih", (4 * hidden_size,)),
        ("rnn1_b_hh", (4 * hidden_size,)),
        ("rnn2_w_ih", (4 * hidden_size, hidden_size)),
        ("rnn2_w_hh", (4 * hidden_size, hidden_size)),
        ("rnn2_b_ih", (4 * hidden_size,)),
        ("rnn2_b_hh", (4 * hidden_size,)),
        ("dense_w", (input_size, hidden_size)),
        ("dense_b", (input_size,)),
    ]
    keys = jax.random.split(key, len(names_shapes))
    params = {}
    for k_, (name, shape) in zip(keys, names_shapes):
        params[name] = jax.random.uniform(
            k_, shape, jnp.float32, minval=-bound, maxval=bound)
    return params


def seperation_block_forward(x, h1_in, c1_in, h2_in, c2_in, params):
    """x: [N, T, F]; h*/c*: [1, N, H].  Returns (mask [N, T, F], states [4, N, H])."""
    N, T, F = x.shape
    H = params["rnn1_w_hh"].shape[1]
    F_pad = ((F + 127) // 128) * 128

    # Gate permutation: PyTorch order (i, f, g, o) -> kernel order (i, f, o, g)
    # so the sigmoid gates are contiguous and tanh gate is last.
    perm = jnp.concatenate([jnp.arange(0, 2 * H),          # i, f
                            jnp.arange(3 * H, 4 * H),      # o
                            jnp.arange(2 * H, 3 * H)])     # g

    def prep(w_ih, w_hh, b_ih, b_hh):
        w_ih_t = w_ih.T[:, perm]                             # [in, 4H], permuted
        w_hh_t = w_hh.T[:, perm]                             # [H, 4H], permuted
        b = (b_ih + b_hh)[perm][None, :]                     # [1, 4H]
        return w_ih_t, w_hh_t, b

    w_ih1, w_hh1, b1 = prep(params["rnn1_w_ih"], params["rnn1_w_hh"],
                            params["rnn1_b_ih"], params["rnn1_b_hh"])
    w_ih2, w_hh2, b2 = prep(params["rnn2_w_ih"], params["rnn2_w_hh"],
                            params["rnn2_b_ih"], params["rnn2_b_hh"])

    # Dense weights zero-padded to a lane-dense width.
    wd = jnp.pad(params["dense_w"].T, ((0, 0), (0, F_pad - F)))     # [H, F_pad]
    bd = jnp.pad(params["dense_b"], (0, F_pad - F))[None, :]        # [1, F_pad]

    # Time-major, flattened input: [T*N, F].
    x_tm = jnp.transpose(x.astype(jnp.float32), (1, 0, 2)).reshape(T * N, F)

    # States stacked as one [4N, H] slab (h1, c1, h2, c2).
    states_in = jnp.concatenate([h1_in, c1_in, h2_in, c2_in], axis=0).astype(
        jnp.float32).reshape(4 * N, H)

    vmem = pl.BlockSpec(memory_space=pltpu.MemorySpace.VMEM)
    mask_tm, states_out = pl.pallas_call(
        _sep_block_kernel,
        out_shape=(jax.ShapeDtypeStruct((T * N, F_pad), jnp.float32),
                   jax.ShapeDtypeStruct((4 * N, H), jnp.float32)),
        in_specs=[vmem] * 10,
        out_specs=(vmem, vmem),
        scratch_shapes=[pltpu.VMEM((T * N, H), jnp.float32)],
        input_output_aliases={1: 1},   # states updated in place
    )(x_tm, states_in, w_ih1, w_hh1, b1, w_ih2, w_hh2, b2, wd, bd)

    # Un-pad lanes and return batch-first layout, PyTorch-shaped states.
    mask = jnp.transpose(mask_tm.reshape(T, N, F_pad)[:, :, :F], (1, 0, 2))
    states = states_out.reshape(4, N, H)
    return mask, states


def reference_forward(x, h1_in, c1_in, h2_in, c2_in, params):
    """Pure-JAX reference mirroring torch.nn.LSTM semantics (for verification)."""
    N, T, F = x.shape
    H = params["rnn1_w_hh"].shape[1]

    def lstm_cell(xt, h, c, w_ih, w_hh, b_ih, b_hh):
        gates = xt @ w_ih.T + h @ w_hh.T + b_ih + b_hh
        i = jax.nn.sigmoid(gates[:, 0 * H:1 * H])
        f = jax.nn.sigmoid(gates[:, 1 * H:2 * H])
        g = jnp.tanh(gates[:, 2 * H:3 * H])
        o = jax.nn.sigmoid(gates[:, 3 * H:4 * H])
        c_new = f * c + i * g
        return o * jnp.tanh(c_new), c_new

    h1, c1 = h1_in[0], c1_in[0]
    h2, c2 = h2_in[0], c2_in[0]
    masks = []
    for t in range(T):
        xt = x[:, t, :]
        h1, c1 = lstm_cell(xt, h1, c1, params["rnn1_w_ih"], params["rnn1_w_hh"],
                           params["rnn1_b_ih"], params["rnn1_b_hh"])
        h2, c2 = lstm_cell(h1, h2, c2, params["rnn2_w_ih"], params["rnn2_w_hh"],
                           params["rnn2_b_ih"], params["rnn2_b_hh"])
        masks.append(jax.nn.sigmoid(h2 @ params["dense_w"].T + params["dense_b"]))
    mask = jnp.stack(masks, axis=1)
    states = jnp.stack([h1, c1, h2, c2], axis=0)
    return mask, states


if __name__ == "__main__":
    # Small shapes consistent with the module; N=8 fills all 8 sublanes.
    N, T = 8, 8
    INPUT_SIZE, HIDDEN_SIZE = 64, 32

    key = jax.random.PRNGKey(0)
    kx, kh1, kc1, kh2, kc2 = jax.random.split(key, 5)

    x = jax.random.normal(kx, (N, T, INPUT_SIZE), jnp.float32)
    h1_in = jax.random.normal(kh1, (1, N, HIDDEN_SIZE), jnp.float32)
    c1_in = jax.random.normal(kc1, (1, N, HIDDEN_SIZE), jnp.float32)
    h2_in = jax.random.normal(kh2, (1, N, HIDDEN_SIZE), jnp.float32)
    c2_in = jax.random.normal(kc2, (1, N, HIDDEN_SIZE), jnp.float32)

    params = init_params(jax.random.PRNGKey(42), INPUT_SIZE, HIDDEN_SIZE)

    mask, out_states = seperation_block_forward(x, h1_in, c1_in, h2_in, c2_in,
                                                params)
    mask = jax.block_until_ready(mask)
    out_states = jax.block_until_ready(out_states)

    assert mask.shape == (N, T, INPUT_SIZE)
    assert out_states.shape == (4, N, HIDDEN_SIZE)

    ref_mask, ref_states = reference_forward(x, h1_in, c1_in, h2_in, c2_in,
                                             params)
    assert jnp.allclose(mask, ref_mask, rtol=1e-5, atol=1e-5)
    assert jnp.allclose(out_states, ref_states, rtol=1e-5, atol=1e-5)

    print("KERNEL_OK")
</pallas_src>

<mosaic_0001>
module attributes {stable_mosaic.version = 11 : i64} {
  func.func @_sep_block_kernel(%arg0: memref<64x64xf32, #tpu.memory_space<vmem>>, %arg1: memref<32x32xf32, #tpu.memory_space<vmem>>, %arg2: memref<64x128xf32, #tpu.memory_space<vmem>>, %arg3: memref<32x128xf32, #tpu.memory_space<vmem>>, %arg4: memref<1x128xf32, #tpu.memory_space<vmem>>, %arg5: memref<32x128xf32, #tpu.memory_space<vmem>>, %arg6: memref<32x128xf32, #tpu.memory_space<vmem>>, %arg7: memref<1x128xf32, #tpu.memory_space<vmem>>, %arg8: memref<32x128xf32, #tpu.memory_space<vmem>>, %arg9: memref<1x128xf32, #tpu.memory_space<vmem>>, %arg10: memref<64x128xf32, #tpu.memory_space<vmem>>, %arg11: memref<32x32xf32, #tpu.memory_space<vmem>>, %arg12: memref<64x32xf32, #tpu.memory_space<vmem>>) attributes {dimension_semantics = [], scalar_prefetch = 0 : i64, scratch_operands = 1 : i64, tpu.core_type = #tpu.core_type<tc>} {
    %c0 = arith.constant 0 : index
    %c0_0 = arith.constant 0 : index
    %0 = vector.load %arg3[%c0, %c0_0] : memref<32x128xf32, #tpu.memory_space<vmem>>, vector<32x128xf32>
    %c0_1 = arith.constant 0 : index
    %c0_2 = arith.constant 0 : index
    %1 = vector.load %arg5[%c0_1, %c0_2] : memref<32x128xf32, #tpu.memory_space<vmem>>, vector<32x128xf32>
    %c0_3 = arith.constant 0 : index
    %c0_4 = arith.constant 0 : index
    %2 = vector.load %arg6[%c0_3, %c0_4] : memref<32x128xf32, #tpu.memory_space<vmem>>, vector<32x128xf32>
    %c0_5 = arith.constant 0 : index
    %c0_6 = arith.constant 0 : index
    %3 = vector.load %arg7[%c0_5, %c0_6] : memref<1x128xf32, #tpu.memory_space<vmem>>, vector<1x128xf32>
    %c0_7 = arith.constant 0 : index
    %c0_8 = arith.constant 0 : index
    %4 = vector.load %arg0[%c0_7, %c0_8] : memref<64x64xf32, #tpu.memory_space<vmem>>, vector<64x64xf32>
    %c0_9 = arith.constant 0 : index
    %c0_10 = arith.constant 0 : index
    %5 = vector.load %arg2[%c0_9, %c0_10] : memref<64x128xf32, #tpu.memory_space<vmem>>, vector<64x128xf32>
    %cst = arith.constant dense<0.000000e+00> : vector<64x128xf32>
    %6 = tpu.matmul %4, %5, %cst {dimension_numbers = #tpu.dot_dimension_numbers<[1], [0], [0], [1], [0, 0, 1, 1], [], []>} : vector<64x64xf32>, vector<64x128xf32>, vector<64x128xf32> -> vector<64x128xf32>
    %c0_11 = arith.constant 0 : index
    %c0_12 = arith.constant 0 : index
    %7 = vector.load %arg4[%c0_11, %c0_12] : memref<1x128xf32, #tpu.memory_space<vmem>>, vector<1x128xf32>
    %8 = vector.broadcast %7 : vector<1x128xf32> to vector<64x128xf32>
    %9 = arith.addf %6, %8 : vector<64x128xf32>
    %c0_13 = arith.constant 0 : index
    %c0_14 = arith.constant 0 : index
    %10 = vector.load %arg1[%c0_13, %c0_14] : memref<32x32xf32, #tpu.memory_space<vmem>>, vector<8x32xf32>
    %c8 = arith.constant 8 : index
    %c0_15 = arith.constant 0 : index
    %11 = vector.load %arg1[%c8, %c0_15] : memref<32x32xf32, #tpu.memory_space<vmem>>, vector<8x32xf32>
    %c16 = arith.constant 16 : index
    %c0_16 = arith.constant 0 : index
    %12 = vector.load %arg1[%c16, %c0_16] : memref<32x32xf32, #tpu.memory_space<vmem>>, vector<8x32xf32>
    %c24 = arith.constant 24 : index
    %c0_17 = arith.constant 0 : index
    %13 = vector.load %arg1[%c24, %c0_17] : memref<32x32xf32, #tpu.memory_space<vmem>>, vector<8x32xf32>
    %14 = vector.extract_strided_slice %9 {offsets = [0, 0], sizes = [8, 128], strides = [1, 1]} : vector<64x128xf32> to vector<8x128xf32>
    %cst_18 = arith.constant dense<0.000000e+00> : vector<8x128xf32>
    %15 = tpu.matmul %10, %0, %cst_18 {dimension_numbers = #tpu.dot_dimension_numbers<[1], [0], [0], [1], [0, 0, 1, 1], [], []>} : vector<8x32xf32>, vector<32x128xf32>, vector<8x128xf32> -> vector<8x128xf32>
    %16 = arith.addf %14, %15 : vector<8x128xf32>
    %17 = vector.extract_strided_slice %16 {offsets = [0, 0], sizes = [8, 96], strides = [1, 1]} : vector<8x128xf32> to vector<8x96xf32>
    %18 = arith.negf %17 : vector<8x96xf32>
    %19 = math.exp %18 : vector<8x96xf32>
    %cst_19 = arith.constant 1.000000e+00 : f32
    %20 = vector.broadcast %cst_19 : f32 to vector<8x96xf32>
    %21 = arith.addf %20, %19 : vector<8x96xf32>
    %22 = arith.divf %20, %21 : vector<8x96xf32>
    %23 = vector.extract_strided_slice %16 {offsets = [0, 96], sizes = [8, 32], strides = [1, 1]} : vector<8x128xf32> to vector<8x32xf32>
    %24 = math.tanh %23 : vector<8x32xf32>
    %25 = vector.extract_strided_slice %22 {offsets = [0, 0], sizes = [8, 32], strides = [1, 1]} : vector<8x96xf32> to vector<8x32xf32>
    %26 = vector.extract_strided_slice %22 {offsets = [0, 32], sizes = [8, 32], strides = [1, 1]} : vector<8x96xf32> to vector<8x32xf32>
    %27 = vector.extract_strided_slice %22 {offsets = [0, 64], sizes = [8, 32], strides = [1, 1]} : vector<8x96xf32> to vector<8x32xf32>
    %28 = arith.mulf %26, %11 : vector<8x32xf32>
    %29 = arith.mulf %25, %24 : vector<8x32xf32>
    %30 = arith.addf %28, %29 : vector<8x32xf32>
    %31 = math.tanh %30 : vector<8x32xf32>
    %32 = arith.mulf %27, %31 : vector<8x32xf32>
    %cst_20 = arith.constant dense<0.000000e+00> : vector<8x128xf32>
    %33 = tpu.matmul %32, %1, %cst_20 {dimension_numbers = #tpu.dot_dimension_numbers<[1], [0], [0], [1], [0, 0, 1, 1], [], []>} : vector<8x32xf32>, vector<32x128xf32>, vector<8x128xf32> -> vector<8x128xf32>
    %cst_21 = arith.constant dense<0.000000e+00> : vector<8x128xf32>
    %34 = tpu.matmul %12, %2, %cst_21 {dimension_numbers = #tpu.dot_dimension_numbers<[1], [0], [0], [1], [0, 0, 1, 1], [], []>} : vector<8x32xf32>, vector<32x128xf32>, vector<8x128xf32> -> vector<8x128xf32>
    %35 = arith.addf %33, %34 : vector<8x128xf32>
    %36 = vector.broadcast %3 : vector<1x128xf32> to vector<8x128xf32>
    %37 = arith.addf %35, %36 : vector<8x128xf32>
    %38 = vector.extract_strided_slice %37 {offsets = [0, 0], sizes = [8, 96], strides = [1, 1]} : vector<8x128xf32> to vector<8x96xf32>
    %39 = arith.negf %38 : vector<8x96xf32>
    %40 = math.exp %39 : vector<8x96xf32>
    %cst_22 = arith.constant 1.000000e+00 : f32
    %41 = vector.broadcast %cst_22 : f32 to vector<8x96xf32>
    %42 = arith.addf %41, %40 : vector<8x96xf32>
    %43 = arith.divf %41, %42 : vector<8x96xf32>
    %44 = vector.extract_strided_slice %37 {offsets = [0, 96], sizes = [8, 32], strides = [1, 1]} : vector<8x128xf32> to vector<8x32xf32>
    %45 = math.tanh %44 : vector<8x32xf32>
    %46 = vector.extract_strided_slice %43 {offsets = [0, 0], sizes = [8, 32], strides = [1, 1]} : vector<8x96xf32> to vector<8x32xf32>
    %47 = vector.extract_strided_slice %43 {offsets = [0, 32], sizes = [8, 32], strides = [1, 1]} : vector<8x96xf32> to vector<8x32xf32>
    %48 = vector.extract_strided_slice %43 {offsets = [0, 64], sizes = [8, 32], strides = [1, 1]} : vector<8x96xf32> to vector<8x32xf32>
    %49 = arith.mulf %47, %13 : vector<8x32xf32>
    %50 = arith.mulf %46, %45 : vector<8x32xf32>
    %51 = arith.addf %49, %50 : vector<8x32xf32>
    %52 = math.tanh %51 : vector<8x32xf32>
    %53 = arith.mulf %48, %52 : vector<8x32xf32>
    %c0_23 = arith.constant 0 : index
    %c0_24 = arith.constant 0 : index
    %54 = vector.load %arg12[%c0_23, %c0_24] : memref<64x32xf32, #tpu.memory_space<vmem>>, vector<8x32xf32>
    tpu.vector_store %arg12[%c0_23, %c0_24], %53 {strides = array<i32>} : memref<64x32xf32, #tpu.memory_space<vmem>>, vector<8x32xf32>,
    %55 = vector.extract_strided_slice %9 {offsets = [8, 0], sizes = [8, 128], strides = [1, 1]} : vector<64x128xf32> to vector<8x128xf32>
    %cst_25 = arith.constant dense<0.000000e+00> : vector<8x128xf32>
    %56 = tpu.matmul %32, %0, %cst_25 {dimension_numbers = #tpu.dot_dimension_numbers<[1], [0], [0], [1], [0, 0, 1, 1], [], []>} : vector<8x32xf32>, vector<32x128xf32>, vector<8x128xf32> -> vector<8x128xf32>
    %57 = arith.addf %55, %56 : vector<8x128xf32>
    %58 = vector.extract_strided_slice %57 {offsets = [0, 0], sizes = [8, 96], strides = [1, 1]} : vector<8x128xf32> to vector<8x96xf32>
    %59 = arith.negf %58 : vector<8x96xf32>
    %60 = math.exp %59 : vector<8x96xf32>
    %cst_26 = arith.constant 1.000000e+00 : f32
    %61 = vector.broadcast %cst_26 : f32 to vector<8x96xf32>
    %62 = arith.addf %61, %60 : vector<8x96xf32>
    %63 = arith.divf %61, %62 : vector<8x96xf32>
    %64 = vector.extract_strided_slice %57 {offsets = [0, 96], sizes = [8, 32], strides = [1, 1]} : vector<8x128xf32> to vector<8x32xf32>
    %65 = math.tanh %64 : vector<8x32xf32>
    %66 = vector.extract_strided_slice %63 {offsets = [0, 0], sizes = [8, 32], strides = [1, 1]} : vector<8x96xf32> to vector<8x32xf32>
    %67 = vector.extract_strided_slice %63 {offsets = [0, 32], sizes = [8, 32], strides = [1, 1]} : vector<8x96xf32> to vector<8x32xf32>
    %68 = vector.extract_strided_slice %63 {offsets = [0, 64], sizes = [8, 32], strides = [1, 1]} : vector<8x96xf32> to vector<8x32xf32>
    %69 = arith.mulf %67, %30 : vector<8x32xf32>
    %70 = arith.mulf %66, %65 : vector<8x32xf32>
    %71 = arith.addf %69, %70 : vector<8x32xf32>
    %72 = math.tanh %71 : vector<8x32xf32>
    %73 = arith.mulf %68, %72 : vector<8x32xf32>
    %cst_27 = arith.constant dense<0.000000e+00> : vector<8x128xf32>
    %74 = tpu.matmul %73, %1, %cst_27 {dimension_numbers = #tpu.dot_dimension_numbers<[1], [0], [0], [1], [0, 0, 1, 1], [], []>} : vector<8x32xf32>, vector<32x128xf32>, vector<8x128xf32> -> vector<8x128xf32>
    %cst_28 = arith.constant dense<0.000000e+00> : vector<8x128xf32>
    %75 = tpu.matmul %53, %2, %cst_28 {dimension_numbers = #tpu.dot_dimension_numbers<[1], [0], [0], [1], [0, 0, 1, 1], [], []>} : vector<8x32xf32>, vector<32x128xf32>, vector<8x128xf32> -> vector<8x128xf32>
    %76 = arith.addf %74, %75 : vector<8x128xf32>
    %77 = vector.broadcast %3 : vector<1x128xf32> to vector<8x128xf32>
    %78 = arith.addf %76, %77 : vector<8x128xf32>
    %79 = vector.extract_strided_slice %78 {offsets = [0, 0], sizes = [8, 96], strides = [1, 1]} : vector<8x128xf32> to vector<8x96xf32>
    %80 = arith.negf %79 : vector<8x96xf32>
    %81 = math.exp %80 : vector<8x96xf32>
    %cst_29 = arith.constant 1.000000e+00 : f32
    %82 = vector.broadcast %cst_29 : f32 to vector<8x96xf32>
    %83 = arith.addf %82, %81 : vector<8x96xf32>
    %84 = arith.divf %82, %83 : vector<8x96xf32>
    %85 = vector.extract_strided_slice %78 {offsets = [0, 96], sizes = [8, 32], strides = [1, 1]} : vector<8x128xf32> to vector<8x32xf32>
    %86 = math.tanh %85 : vector<8x32xf32>
    %87 = vector.extract_strided_slice %84 {offsets = [0, 0], sizes = [8, 32], strides = [1, 1]} : vector<8x96xf32> to vector<8x32xf32>
    %88 = vector.extract_strided_slice %84 {offsets = [0, 32], sizes = [8, 32], strides = [1, 1]} : vector<8x96xf32> to vector<8x32xf32>
    %89 = vector.extract_strided_slice %84 {offsets = [0, 64], sizes = [8, 32], strides = [1, 1]} : vector<8x96xf32> to vector<8x32xf32>
    %90 = arith.mulf %88, %51 : vector<8x32xf32>
    %91 = arith.mulf %87, %86 : vector<8x32xf32>
    %92 = arith.addf %90, %91 : vector<8x32xf32>
    %93 = math.tanh %92 : vector<8x32xf32>
    %94 = arith.mulf %89, %93 : vector<8x32xf32>
    %c8_30 = arith.constant 8 : index
    %c0_31 = arith.constant 0 : index
    %95 = vector.load %arg12[%c8_30, %c0_31] : memref<64x32xf32, #tpu.memory_space<vmem>>, vector<8x32xf32>
    tpu.vector_store %arg12[%c8_30, %c0_31], %94 {strides = array<i32>} : memref<64x32xf32, #tpu.memory_space<vmem>>, vector<8x32xf32>,
    %96 = vector.extract_strided_slice %9 {offsets = [16, 0], sizes = [8, 128], strides = [1, 1]} : vector<64x128xf32> to vector<8x128xf32>
    %cst_32 = arith.constant dense<0.000000e+00> : vector<8x128xf32>
    %97 = tpu.matmul %73, %0, %cst_32 {dimension_numbers = #tpu.dot_dimension_numbers<[1], [0], [0], [1], [0, 0, 1, 1], [], []>} : vector<8x32xf32>, vector<32x128xf32>, vector<8x128xf32> -> vector<8x128xf32>
    %98 = arith.addf %96, %97 : vector<8x128xf32>
    %99 = vector.extract_strided_slice %98 {offsets = [0, 0], sizes = [8, 96], strides = [1, 1]} : vector<8x128xf32> to vector<8x96xf32>
    %100 = arith.negf %99 : vector<8x96xf32>
    %101 = math.exp %100 : vector<8x96xf32>
    %cst_33 = arith.constant 1.000000e+00 : f32
    %102 = vector.broadcast %cst_33 : f32 to vector<8x96xf32>
    %103 = arith.addf %102, %101 : vector<8x96xf32>
    %104 = arith.divf %102, %103 : vector<8x96xf32>
    %105 = vector.extract_strided_slice %98 {offsets = [0, 96], sizes = [8, 32], strides = [1, 1]} : vector<8x128xf32> to vector<8x32xf32>
    %106 = math.tanh %105 : vector<8x32xf32>
    %107 = vector.extract_strided_slice %104 {offsets = [0, 0], sizes = [8, 32], strides = [1, 1]} : vector<8x96xf32> to vector<8x32xf32>
    %108 = vector.extract_strided_slice %104 {offsets = [0, 32], sizes = [8, 32], strides = [1, 1]} : vector<8x96xf32> to vector<8x32xf32>
    %109 = vector.extract_strided_slice %104 {offsets = [0, 64], sizes = [8, 32], strides = [1, 1]} : vector<8x96xf32> to vector<8x32xf32>
    %110 = arith.mulf %108, %71 : vector<8x32xf32>
    %111 = arith.mulf %107, %106 : vector<8x32xf32>
    %112 = arith.addf %110, %111 : vector<8x32xf32>
    %113 = math.tanh %112 : vector<8x32xf32>
    %114 = arith.mulf %109, %113 : vector<8x32xf32>
    %cst_34 = arith.constant dense<0.000000e+00> : vector<8x128xf32>
    %115 = tpu.matmul %114, %1, %cst_34 {dimension_numbers = #tpu.dot_dimension_numbers<[1], [0], [0], [1], [0, 0, 1, 1], [], []>} : vector<8x32xf32>, vector<32x128xf32>, vector<8x128xf32> -> vector<8x128xf32>
    %cst_35 = arith.constant dense<0.000000e+00> : vector<8x128xf32>
    %116 = tpu.matmul %94, %2, %cst_35 {dimension_numbers = #tpu.dot_dimension_numbers<[1], [0], [0], [1], [0, 0, 1, 1], [], []>} : vector<8x32xf32>, vector<32x128xf32>, vector<8x128xf32> -> vector<8x128xf32>
    %117 = arith.addf %115, %116 : vector<8x128xf32>
    %118 = vector.broadcast %3 : vector<1x128xf32> to vector<8x128xf32>
    %119 = arith.addf %117, %118 : vector<8x128xf32>
    %120 = vector.extract_strided_slice %119 {offsets = [0, 0], sizes = [8, 96], strides = [1, 1]} : vector<8x128xf32> to vector<8x96xf32>
    %121 = arith.negf %120 : vector<8x96xf32>
    %122 = math.exp %121 : vector<8x96xf32>
    %cst_36 = arith.constant 1.000000e+00 : f32
    %123 = vector.broadcast %cst_36 : f32 to vector<8x96xf32>
    %124 = arith.addf %123, %122 : vector<8x96xf32>
    %125 = arith.divf %123, %124 : vector<8x96xf32>
    %126 = vector.extract_strided_slice %119 {offsets = [0, 96], sizes = [8, 32], strides = [1, 1]} : vector<8x128xf32> to vector<8x32xf32>
    %127 = math.tanh %126 : vector<8x32xf32>
    %128 = vector.extract_strided_slice %125 {offsets = [0, 0], sizes = [8, 32], strides = [1, 1]} : vector<8x96xf32> to vector<8x32xf32>
    %129 = vector.extract_strided_slice %125 {offsets = [0, 32], sizes = [8, 32], strides = [1, 1]} : vector<8x96xf32> to vector<8x32xf32>
    %130 = vector.extract_strided_slice %125 {offsets = [0, 64], sizes = [8, 32], strides = [1, 1]} : vector<8x96xf32> to vector<8x32xf32>
    %131 = arith.mulf %129, %92 : vector<8x32xf32>
    %132 = arith.mulf %128, %127 : vector<8x32xf32>
    %133 = arith.addf %131, %132 : vector<8x32xf32>
    %134 = math.tanh %133 : vector<8x32xf32>
    %135 = arith.mulf %130, %134 : vector<8x32xf32>
    %c16_37 = arith.constant 16 : index
    %c0_38 = arith.constant 0 : index
    %136 = vector.load %arg12[%c16_37, %c0_38] : memref<64x32xf32, #tpu.memory_space<vmem>>, vector<8x32xf32>
    tpu.vector_store %arg12[%c16_37, %c0_38], %135 {strides = array<i32>} : memref<64x32xf32, #tpu.memory_space<vmem>>, vector<8x32xf32>,
    %137 = vector.extract_strided_slice %9 {offsets = [24, 0], sizes = [8, 128], strides = [1, 1]} : vector<64x128xf32> to vector<8x128xf32>
    %cst_39 = arith.constant dense<0.000000e+00> : vector<8x128xf32>
    %138 = tpu.matmul %114, %0, %cst_39 {dimension_numbers = #tpu.dot_dimension_numbers<[1], [0], [0], [1], [0, 0, 1, 1], [], []>} : vector<8x32xf32>, vector<32x128xf32>, vector<8x128xf32> -> vector<8x128xf32>
    %139 = arith.addf %137, %138 : vector<8x128xf32>
    %140 = vector.extract_strided_slice %139 {offsets = [0, 0], sizes = [8, 96], strides = [1, 1]} : vector<8x128xf32> to vector<8x96xf32>
    %141 = arith.negf %140 : vector<8x96xf32>
    %142 = math.exp %141 : vector<8x96xf32>
    %cst_40 = arith.constant 1.000000e+00 : f32
    %143 = vector.broadcast %cst_40 : f32 to vector<8x96xf32>
    %144 = arith.addf %143, %142 : vector<8x96xf32>
    %145 = arith.divf %143, %144 : vector<8x96xf32>
    %146 = vector.extract_strided_slice %139 {offsets = [0, 96], sizes = [8, 32], strides = [1, 1]} : vector<8x128xf32> to vector<8x32xf32>
    %147 = math.tanh %146 : vector<8x32xf32>
    %148 = vector.extract_strided_slice %145 {offsets = [0, 0], sizes = [8, 32], strides = [1, 1]} : vector<8x96xf32> to vector<8x32xf32>
    %149 = vector.extract_strided_slice %145 {offsets = [0, 32], sizes = [8, 32], strides = [1, 1]} : vector<8x96xf32> to vector<8x32xf32>
    %150 = vector.extract_strided_slice %145 {offsets = [0, 64], sizes = [8, 32], strides = [1, 1]} : vector<8x96xf32> to vector<8x32xf32>
    %151 = arith.mulf %149, %112 : vector<8x32xf32>
    %152 = arith.mulf %148, %147 : vector<8x32xf32>
    %153 = arith.addf %151, %152 : vector<8x32xf32>
    %154 = math.tanh %153 : vector<8x32xf32>
    %155 = arith.mulf %150, %154 : vector<8x32xf32>
    %cst_41 = arith.constant dense<0.000000e+00> : vector<8x128xf32>
    %156 = tpu.matmul %155, %1, %cst_41 {dimension_numbers = #tpu.dot_dimension_numbers<[1], [0], [0], [1], [0, 0, 1, 1], [], []>} : vector<8x32xf32>, vector<32x128xf32>, vector<8x128xf32> -> vector<8x128xf32>
    %cst_42 = arith.constant dense<0.000000e+00> : vector<8x128xf32>
    %157 = tpu.matmul %135, %2, %cst_42 {dimension_numbers = #tpu.dot_dimension_numbers<[1], [0], [0], [1], [0, 0, 1, 1], [], []>} : vector<8x32xf32>, vector<32x128xf32>, vector<8x128xf32> -> vector<8x128xf32>
    %158 = arith.addf %156, %157 : vector<8x128xf32>
    %159 = vector.broadcast %3 : vector<1x128xf32> to vector<8x128xf32>
    %160 = arith.addf %158, %159 : vector<8x128xf32>
    %161 = vector.extract_strided_slice %160 {offsets = [0, 0], sizes = [8, 96], strides = [1, 1]} : vector<8x128xf32> to vector<8x96xf32>
    %162 = arith.negf %161 : vector<8x96xf32>
    %163 = math.exp %162 : vector<8x96xf32>
    %cst_43 = arith.constant 1.000000e+00 : f32
    %164 = vector.broadcast %cst_43 : f32 to vector<8x96xf32>
    %165 = arith.addf %164, %163 : vector<8x96xf32>
    %166 = arith.divf %164, %165 : vector<8x96xf32>
    %167 = vector.extract_strided_slice %160 {offsets = [0, 96], sizes = [8, 32], strides = [1, 1]} : vector<8x128xf32> to vector<8x32xf32>
    %168 = math.tanh %167 : vector<8x32xf32>
    %169 = vector.extract_strided_slice %166 {offsets = [0, 0], sizes = [8, 32], strides = [1, 1]} : vector<8x96xf32> to vector<8x32xf32>
    %170 = vector.extract_strided_slice %166 {offsets = [0, 32], sizes = [8, 32], strides = [1, 1]} : vector<8x96xf32> to vector<8x32xf32>
    %171 = vector.extract_strided_slice %166 {offsets = [0, 64], sizes = [8, 32], strides = [1, 1]} : vector<8x96xf32> to vector<8x32xf32>
    %172 = arith.mulf %170, %133 : vector<8x32xf32>
    %173 = arith.mulf %169, %168 : vector<8x32xf32>
    %174 = arith.addf %172, %173 : vector<8x32xf32>
    %175 = math.tanh %174 : vector<8x32xf32>
    %176 = arith.mulf %171, %175 : vector<8x32xf32>
    %c24_44 = arith.constant 24 : index
    %c0_45 = arith.constant 0 : index
    %177 = vector.load %arg12[%c24_44, %c0_45] : memref<64x32xf32, #tpu.memory_space<vmem>>, vector<8x32xf32>
    tpu.vector_store %arg12[%c24_44, %c0_45], %176 {strides = array<i32>} : memref<64x32xf32, #tpu.memory_space<vmem>>, vector<8x32xf32>,
    %178 = vector.extract_strided_slice %9 {offsets = [32, 0], sizes = [8, 128], strides = [1, 1]} : vector<64x128xf32> to vector<8x128xf32>
    %cst_46 = arith.constant dense<0.000000e+00> : vector<8x128xf32>
    %179 = tpu.matmul %155, %0, %cst_46 {dimension_numbers = #tpu.dot_dimension_numbers<[1], [0], [0], [1], [0, 0, 1, 1], [], []>} : vector<8x32xf32>, vector<32x128xf32>, vector<8x128xf32> -> vector<8x128xf32>
    %180 = arith.addf %178, %179 : vector<8x128xf32>
    %181 = vector.extract_strided_slice %180 {offsets = [0, 0], sizes = [8, 96], strides = [1, 1]} : vector<8x128xf32> to vector<8x96xf32>
    %182 = arith.negf %181 : vector<8x96xf32>
    %183 = math.exp %182 : vector<8x96xf32>
    %cst_47 = arith.constant 1.000000e+00 : f32
    %184 = vector.broadcast %cst_47 : f32 to vector<8x96xf32>
    %185 = arith.addf %184, %183 : vector<8x96xf32>
    %186 = arith.divf %184, %185 : vector<8x96xf32>
    %187 = vector.extract_strided_slice %180 {offsets = [0, 96], sizes = [8, 32], strides = [1, 1]} : vector<8x128xf32> to vector<8x32xf32>
    %188 = math.tanh %187 : vector<8x32xf32>
    %189 = vector.extract_strided_slice %186 {offsets = [0, 0], sizes = [8, 32], strides = [1, 1]} : vector<8x96xf32> to vector<8x32xf32>
    %190 = vector.extract_strided_slice %186 {offsets = [0, 32], sizes = [8, 32], strides = [1, 1]} : vector<8x96xf32> to vector<8x32xf32>
    %191 = vector.extract_strided_slice %186 {offsets = [0, 64], sizes = [8, 32], strides = [1, 1]} : vector<8x96xf32> to vector<8x32xf32>
    %192 = arith.mulf %190, %153 : vector<8x32xf32>
    %193 = arith.mulf %189, %188 : vector<8x32xf32>
    %194 = arith.addf %192, %193 : vector<8x32xf32>
    %195 = math.tanh %194 : vector<8x32xf32>
    %196 = arith.mulf %191, %195 : vector<8x32xf32>
    %cst_48 = arith.constant dense<0.000000e+00> : vector<8x128xf32>
    %197 = tpu.matmul %196, %1, %cst_48 {dimension_numbers = #tpu.dot_dimension_numbers<[1], [0], [0], [1], [0, 0, 1, 1], [], []>} : vector<8x32xf32>, vector<32x128xf32>, vector<8x128xf32> -> vector<8x128xf32>
    %cst_49 = arith.constant dense<0.000000e+00> : vector<8x128xf32>
    %198 = tpu.matmul %176, %2, %cst_49 {dimension_numbers = #tpu.dot_dimension_numbers<[1], [0], [0], [1], [0, 0, 1, 1], [], []>} : vector<8x32xf32>, vector<32x128xf32>, vector<8x128xf32> -> vector<8x128xf32>
    %199 = arith.addf %197, %198 : vector<8x128xf32>
    %200 = vector.broadcast %3 : vector<1x128xf32> to vector<8x128xf32>
    %201 = arith.addf %199, %200 : vector<8x128xf32>
    %202 = vector.extract_strided_slice %201 {offsets = [0, 0], sizes = [8, 96], strides = [1, 1]} : vector<8x128xf32> to vector<8x96xf32>
    %203 = arith.negf %202 : vector<8x96xf32>
    %204 = math.exp %203 : vector<8x96xf32>
    %cst_50 = arith.constant 1.000000e+00 : f32
    %205 = vector.broadcast %cst_50 : f32 to vector<8x96xf32>
    %206 = arith.addf %205, %204 : vector<8x96xf32>
    %207 = arith.divf %205, %206 : vector<8x96xf32>
    %208 = vector.extract_strided_slice %201 {offsets = [0, 96], sizes = [8, 32], strides = [1, 1]} : vector<8x128xf32> to vector<8x32xf32>
    %209 = math.tanh %208 : vector<8x32xf32>
    %210 = vector.extract_strided_slice %207 {offsets = [0, 0], sizes = [8, 32], strides = [1, 1]} : vector<8x96xf32> to vector<8x32xf32>
    %211 = vector.extract_strided_slice %207 {offsets = [0, 32], sizes = [8, 32], strides = [1, 1]} : vector<8x96xf32> to vector<8x32xf32>
    %212 = vector.extract_strided_slice %207 {offsets = [0, 64], sizes = [8, 32], strides = [1, 1]} : vector<8x96xf32> to vector<8x32xf32>
    %213 = arith.mulf %211, %174 : vector<8x32xf32>
    %214 = arith.mulf %210, %209 : vector<8x32xf32>
    %215 = arith.addf %213, %214 : vector<8x32xf32>
    %216 = math.tanh %215 : vector<8x32xf32>
    %217 = arith.mulf %212, %216 : vector<8x32xf32>
    %c32 = arith.constant 32 : index
    %c0_51 = arith.constant 0 : index
    %218 = vector.load %arg12[%c32, %c0_51] : memref<64x32xf32, #tpu.memory_space<vmem>>, vector<8x32xf32>
    tpu.vector_store %arg12[%c32, %c0_51], %217 {strides = array<i32>} : memref<64x32xf32, #tpu.memory_space<vmem>>, vector<8x32xf32>,
    %219 = vector.extract_strided_slice %9 {offsets = [40, 0], sizes = [8, 128], strides = [1, 1]} : vector<64x128xf32> to vector<8x128xf32>
    %cst_52 = arith.constant dense<0.000000e+00> : vector<8x128xf32>
    %220 = tpu.matmul %196, %0, %cst_52 {dimension_numbers = #tpu.dot_dimension_numbers<[1], [0], [0], [1], [0, 0, 1, 1], [], []>} : vector<8x32xf32>, vector<32x128xf32>, vector<8x128xf32> -> vector<8x128xf32>
    %221 = arith.addf %219, %220 : vector<8x128xf32>
    %222 = vector.extract_strided_slice %221 {offsets = [0, 0], sizes = [8, 96], strides = [1, 1]} : vector<8x128xf32> to vector<8x96xf32>
    %223 = arith.negf %222 : vector<8x96xf32>
    %224 = math.exp %223 : vector<8x96xf32>
    %cst_53 = arith.constant 1.000000e+00 : f32
    %225 = vector.broadcast %cst_53 : f32 to vector<8x96xf32>
    %226 = arith.addf %225, %224 : vector<8x96xf32>
    %227 = arith.divf %225, %226 : vector<8x96xf32>
    %228 = vector.extract_strided_slice %221 {offsets = [0, 96], sizes = [8, 32], strides = [1, 1]} : vector<8x128xf32> to vector<8x32xf32>
    %229 = math.tanh %228 : vector<8x32xf32>
    %230 = vector.extract_strided_slice %227 {offsets = [0, 0], sizes = [8, 32], strides = [1, 1]} : vector<8x96xf32> to vector<8x32xf32>
    %231 = vector.extract_strided_slice %227 {offsets = [0, 32], sizes = [8, 32], strides = [1, 1]} : vector<8x96xf32> to vector<8x32xf32>
    %232 = vector.extract_strided_slice %227 {offsets = [0, 64], sizes = [8, 32], strides = [1, 1]} : vector<8x96xf32> to vector<8x32xf32>
    %233 = arith.mulf %231, %194 : vector<8x32xf32>
    %234 = arith.mulf %230, %229 : vector<8x32xf32>
    %235 = arith.addf %233, %234 : vector<8x32xf32>
    %236 = math.tanh %235 : vector<8x32xf32>
    %237 = arith.mulf %232, %236 : vector<8x32xf32>
    %cst_54 = arith.constant dense<0.000000e+00> : vector<8x128xf32>
    %238 = tpu.matmul %237, %1, %cst_54 {dimension_numbers = #tpu.dot_dimension_numbers<[1], [0], [0], [1], [0, 0, 1, 1], [], []>} : vector<8x32xf32>, vector<32x128xf32>, vector<8x128xf32> -> vector<8x128xf32>
    %cst_55 = arith.constant dense<0.000000e+00> : vector<8x128xf32>
    %239 = tpu.matmul %217, %2, %cst_55 {dimension_numbers = #tpu.dot_dimension_numbers<[1], [0], [0], [1], [0, 0, 1, 1], [], []>} : vector<8x32xf32>, vector<32x128xf32>, vector<8x128xf32> -> vector<8x128xf32>
    %240 = arith.addf %238, %239 : vector<8x128xf32>
    %241 = vector.broadcast %3 : vector<1x128xf32> to vector<8x128xf32>
    %242 = arith.addf %240, %241 : vector<8x128xf32>
    %243 = vector.extract_strided_slice %242 {offsets = [0, 0], sizes = [8, 96], strides = [1, 1]} : vector<8x128xf32> to vector<8x96xf32>
    %244 = arith.negf %243 : vector<8x96xf32>
    %245 = math.exp %244 : vector<8x96xf32>
    %cst_56 = arith.constant 1.000000e+00 : f32
    %246 = vector.broadcast %cst_56 : f32 to vector<8x96xf32>
    %247 = arith.addf %246, %245 : vector<8x96xf32>
    %248 = arith.divf %246, %247 : vector<8x96xf32>
    %249 = vector.extract_strided_slice %242 {offsets = [0, 96], sizes = [8, 32], strides = [1, 1]} : vector<8x128xf32> to vector<8x32xf32>
    %250 = math.tanh %249 : vector<8x32xf32>
    %251 = vector.extract_strided_slice %248 {offsets = [0, 0], sizes = [8, 32], strides = [1, 1]} : vector<8x96xf32> to vector<8x32xf32>
    %252 = vector.extract_strided_slice %248 {offsets = [0, 32], sizes = [8, 32], strides = [1, 1]} : vector<8x96xf32> to vector<8x32xf32>
    %253 = vector.extract_strided_slice %248 {offsets = [0, 64], sizes = [8, 32], strides = [1, 1]} : vector<8x96xf32> to vector<8x32xf32>
    %254 = arith.mulf %252, %215 : vector<8x32xf32>
    %255 = arith.mulf %251, %250 : vector<8x32xf32>
    %256 = arith.addf %254, %255 : vector<8x32xf32>
    %257 = math.tanh %256 : vector<8x32xf32>
    %258 = arith.mulf %253, %257 : vector<8x32xf32>
    %c40 = arith.constant 40 : index
    %c0_57 = arith.constant 0 : index
    %259 = vector.load %arg12[%c40, %c0_57] : memref<64x32xf32, #tpu.memory_space<vmem>>, vector<8x32xf32>
    tpu.vector_store %arg12[%c40, %c0_57], %258 {strides = array<i32>} : memref<64x32xf32, #tpu.memory_space<vmem>>, vector<8x32xf32>,
    %260 = vector.extract_strided_slice %9 {offsets = [48, 0], sizes = [8, 128], strides = [1, 1]} : vector<64x128xf32> to vector<8x128xf32>
    %cst_58 = arith.constant dense<0.000000e+00> : vector<8x128xf32>
    %261 = tpu.matmul %237, %0, %cst_58 {dimension_numbers = #tpu.dot_dimension_numbers<[1], [0], [0], [1], [0, 0, 1, 1], [], []>} : vector<8x32xf32>, vector<32x128xf32>, vector<8x128xf32> -> vector<8x128xf32>
    %262 = arith.addf %260, %261 : vector<8x128xf32>
    %263 = vector.extract_strided_slice %262 {offsets = [0, 0], sizes = [8, 96], strides = [1, 1]} : vector<8x128xf32> to vector<8x96xf32>
    %264 = arith.negf %263 : vector<8x96xf32>
    %265 = math.exp %264 : vector<8x96xf32>
    %cst_59 = arith.constant 1.000000e+00 : f32
    %266 = vector.broadcast %cst_59 : f32 to vector<8x96xf32>
    %267 = arith.addf %266, %265 : vector<8x96xf32>
    %268 = arith.divf %266, %267 : vector<8x96xf32>
    %269 = vector.extract_strided_slice %262 {offsets = [0, 96], sizes = [8, 32], strides = [1, 1]} : vector<8x128xf32> to vector<8x32xf32>
    %270 = math.tanh %269 : vector<8x32xf32>
    %271 = vector.extract_strided_slice %268 {offsets = [0, 0], sizes = [8, 32], strides = [1, 1]} : vector<8x96xf32> to vector<8x32xf32>
    %272 = vector.extract_strided_slice %268 {offsets = [0, 32], sizes = [8, 32], strides = [1, 1]} : vector<8x96xf32> to vector<8x32xf32>
    %273 = vector.extract_strided_slice %268 {offsets = [0, 64], sizes = [8, 32], strides = [1, 1]} : vector<8x96xf32> to vector<8x32xf32>
    %274 = arith.mulf %272, %235 : vector<8x32xf32>
    %275 = arith.mulf %271, %270 : vector<8x32xf32>
    %276 = arith.addf %274, %275 : vector<8x32xf32>
    %277 = math.tanh %276 : vector<8x32xf32>
    %278 = arith.mulf %273, %277 : vector<8x32xf32>
    %cst_60 = arith.constant dense<0.000000e+00> : vector<8x128xf32>
    %279 = tpu.matmul %278, %1, %cst_60 {dimension_numbers = #tpu.dot_dimension_numbers<[1], [0], [0], [1], [0, 0, 1, 1], [], []>} : vector<8x32xf32>, vector<32x128xf32>, vector<8x128xf32> -> vector<8x128xf32>
    %cst_61 = arith.constant dense<0.000000e+00> : vector<8x128xf32>
    %280 = tpu.matmul %258, %2, %cst_61 {dimension_numbers = #tpu.dot_dimension_numbers<[1], [0], [0], [1], [0, 0, 1, 1], [], []>} : vector<8x32xf32>, vector<32x128xf32>, vector<8x128xf32> -> vector<8x128xf32>
    %281 = arith.addf %279, %280 : vector<8x128xf32>
    %282 = vector.broadcast %3 : vector<1x128xf32> to vector<8x128xf32>
    %283 = arith.addf %281, %282 : vector<8x128xf32>
    %284 = vector.extract_strided_slice %283 {offsets = [0, 0], sizes = [8, 96], strides = [1, 1]} : vector<8x128xf32> to vector<8x96xf32>
    %285 = arith.negf %284 : vector<8x96xf32>
    %286 = math.exp %285 : vector<8x96xf32>
    %cst_62 = arith.constant 1.000000e+00 : f32
    %287 = vector.broadcast %cst_62 : f32 to vector<8x96xf32>
    %288 = arith.addf %287, %286 : vector<8x96xf32>
    %289 = arith.divf %287, %288 : vector<8x96xf32>
    %290 = vector.extract_strided_slice %283 {offsets = [0, 96], sizes = [8, 32], strides = [1, 1]} : vector<8x128xf32> to vector<8x32xf32>
    %291 = math.tanh %290 : vector<8x32xf32>
    %292 = vector.extract_strided_slice %289 {offsets = [0, 0], sizes = [8, 32], strides = [1, 1]} : vector<8x96xf32> to vector<8x32xf32>
    %293 = vector.extract_strided_slice %289 {offsets = [0, 32], sizes = [8, 32], strides = [1, 1]} : vector<8x96xf32> to vector<8x32xf32>
    %294 = vector.extract_strided_slice %289 {offsets = [0, 64], sizes = [8, 32], strides = [1, 1]} : vector<8x96xf32> to vector<8x32xf32>
    %295 = arith.mulf %293, %256 : vector<8x32xf32>
    %296 = arith.mulf %292, %291 : vector<8x32xf32>
    %297 = arith.addf %295, %296 : vector<8x32xf32>
    %298 = math.tanh %297 : vector<8x32xf32>
    %299 = arith.mulf %294, %298 : vector<8x32xf32>
    %c48 = arith.constant 48 : index
    %c0_63 = arith.constant 0 : index
    %300 = vector.load %arg12[%c48, %c0_63] : memref<64x32xf32, #tpu.memory_space<vmem>>, vector<8x32xf32>
    tpu.vector_store %arg12[%c48, %c0_63], %299 {strides = array<i32>} : memref<64x32xf32, #tpu.memory_space<vmem>>, vector<8x32xf32>,
    %301 = vector.extract_strided_slice %9 {offsets = [56, 0], sizes = [8, 128], strides = [1, 1]} : vector<64x128xf32> to vector<8x128xf32>
    %cst_64 = arith.constant dense<0.000000e+00> : vector<8x128xf32>
    %302 = tpu.matmul %278, %0, %cst_64 {dimension_numbers = #tpu.dot_dimension_numbers<[1], [0], [0], [1], [0, 0, 1, 1], [], []>} : vector<8x32xf32>, vector<32x128xf32>, vector<8x128xf32> -> vector<8x128xf32>
    %303 = arith.addf %301, %302 : vector<8x128xf32>
    %304 = vector.extract_strided_slice %303 {offsets = [0, 0], sizes = [8, 96], strides = [1, 1]} : vector<8x128xf32> to vector<8x96xf32>
    %305 = arith.negf %304 : vector<8x96xf32>
    %306 = math.exp %305 : vector<8x96xf32>
    %cst_65 = arith.constant 1.000000e+00 : f32
    %307 = vector.broadcast %cst_65 : f32 to vector<8x96xf32>
    %308 = arith.addf %307, %306 : vector<8x96xf32>
    %309 = arith.divf %307, %308 : vector<8x96xf32>
    %310 = vector.extract_strided_slice %303 {offsets = [0, 96], sizes = [8, 32], strides = [1, 1]} : vector<8x128xf32> to vector<8x32xf32>
    %311 = math.tanh %310 : vector<8x32xf32>
    %312 = vector.extract_strided_slice %309 {offsets = [0, 0], sizes = [8, 32], strides = [1, 1]} : vector<8x96xf32> to vector<8x32xf32>
    %313 = vector.extract_strided_slice %309 {offsets = [0, 32], sizes = [8, 32], strides = [1, 1]} : vector<8x96xf32> to vector<8x32xf32>
    %314 = vector.extract_strided_slice %309 {offsets = [0, 64], sizes = [8, 32], strides = [1, 1]} : vector<8x96xf32> to vector<8x32xf32>
    %315 = arith.mulf %313, %276 : vector<8x32xf32>
    %316 = arith.mulf %312, %311 : vector<8x32xf32>
    %317 = arith.addf %315, %316 : vector<8x32xf32>
    %318 = math.tanh %317 : vector<8x32xf32>
    %319 = arith.mulf %314, %318 : vector<8x32xf32>
    %cst_66 = arith.constant dense<0.000000e+00> : vector<8x128xf32>
    %320 = tpu.matmul %319, %1, %cst_66 {dimension_numbers = #tpu.dot_dimension_numbers<[1], [0], [0], [1], [0, 0, 1, 1], [], []>} : vector<8x32xf32>, vector<32x128xf32>, vector<8x128xf32> -> vector<8x128xf32>
    %cst_67 = arith.constant dense<0.000000e+00> : vector<8x128xf32>
    %321 = tpu.matmul %299, %2, %cst_67 {dimension_numbers = #tpu.dot_dimension_numbers<[1], [0], [0], [1], [0, 0, 1, 1], [], []>} : vector<8x32xf32>, vector<32x128xf32>, vector<8x128xf32> -> vector<8x128xf32>
    %322 = arith.addf %320, %321 : vector<8x128xf32>
    %323 = vector.broadcast %3 : vector<1x128xf32> to vector<8x128xf32>
    %324 = arith.addf %322, %323 : vector<8x128xf32>
    %325 = vector.extract_strided_slice %324 {offsets = [0, 0], sizes = [8, 96], strides = [1, 1]} : vector<8x128xf32> to vector<8x96xf32>
    %326 = arith.negf %325 : vector<8x96xf32>
    %327 = math.exp %326 : vector<8x96xf32>
    %cst_68 = arith.constant 1.000000e+00 : f32
    %328 = vector.broadcast %cst_68 : f32 to vector<8x96xf32>
    %329 = arith.addf %328, %327 : vector<8x96xf32>
    %330 = arith.divf %328, %329 : vector<8x96xf32>
    %331 = vector.extract_strided_slice %324 {offsets = [0, 96], sizes = [8, 32], strides = [1, 1]} : vector<8x128xf32> to vector<8x32xf32>
    %332 = math.tanh %331 : vector<8x32xf32>
    %333 = vector.extract_strided_slice %330 {offsets = [0, 0], sizes = [8, 32], strides = [1, 1]} : vector<8x96xf32> to vector<8x32xf32>
    %334 = vector.extract_strided_slice %330 {offsets = [0, 32], sizes = [8, 32], strides = [1, 1]} : vector<8x96xf32> to vector<8x32xf32>
    %335 = vector.extract_strided_slice %330 {offsets = [0, 64], sizes = [8, 32], strides = [1, 1]} : vector<8x96xf32> to vector<8x32xf32>
    %336 = arith.mulf %334, %297 : vector<8x32xf32>
    %337 = arith.mulf %333, %332 : vector<8x32xf32>
    %338 = arith.addf %336, %337 : vector<8x32xf32>
    %339 = math.tanh %338 : vector<8x32xf32>
    %340 = arith.mulf %335, %339 : vector<8x32xf32>
    %c56 = arith.constant 56 : index
    %c0_69 = arith.constant 0 : index
    %341 = vector.load %arg12[%c56, %c0_69] : memref<64x32xf32, #tpu.memory_space<vmem>>, vector<8x32xf32>
    tpu.vector_store %arg12[%c56, %c0_69], %340 {strides = array<i32>} : memref<64x32xf32, #tpu.memory_space<vmem>>, vector<8x32xf32>,
    %c0_70 = arith.constant 0 : index
    %c0_71 = arith.constant 0 : index
    %342 = vector.load %arg12[%c0_70, %c0_71] : memref<64x32xf32, #tpu.memory_space<vmem>>, vector<64x32xf32>
    %c0_72 = arith.constant 0 : index
    %c0_73 = arith.constant 0 : index
    %343 = vector.load %arg8[%c0_72, %c0_73] : memref<32x128xf32, #tpu.memory_space<vmem>>, vector<32x128xf32>
    %cst_74 = arith.constant dense<0.000000e+00> : vector<64x128xf32>
    %344 = tpu.matmul %342, %343, %cst_74 {dimension_numbers = #tpu.dot_dimension_numbers<[1], [0], [0], [1], [0, 0, 1, 1], [], []>} : vector<64x32xf32>, vector<32x128xf32>, vector<64x128xf32> -> vector<64x128xf32>
    %c0_75 = arith.constant 0 : index
    %c0_76 = arith.constant 0 : index
    %345 = vector.load %arg9[%c0_75, %c0_76] : memref<1x128xf32, #tpu.memory_space<vmem>>, vector<1x128xf32>
    %346 = vector.broadcast %345 : vector<1x128xf32> to vector<64x128xf32>
    %347 = arith.addf %344, %346 : vector<64x128xf32>
    %348 = arith.negf %347 : vector<64x128xf32>
    %349 = math.exp %348 : vector<64x128xf32>
    %cst_77 = arith.constant 1.000000e+00 : f32
    %350 = vector.broadcast %cst_77 : f32 to vector<64x128xf32>
    %351 = arith.addf %350, %349 : vector<64x128xf32>
    %352 = arith.divf %350, %351 : vector<64x128xf32>
    %c0_78 = arith.constant 0 : index
    %c0_79 = arith.constant 0 : index
    %353 = vector.load %arg10[%c0_78, %c0_79] : memref<64x128xf32, #tpu.memory_space<vmem>>, vector<64x128xf32>
    tpu.vector_store %arg10[%c0_78, %c0_79], %352 {strides = array<i32>} : memref<64x128xf32, #tpu.memory_space<vmem>>, vector<64x128xf32>,
    %354 = tpu.concatenate %319, %317, %340, %338 in 0 : vector<8x32xf32>, vector<8x32xf32>, vector<8x32xf32>, vector<8x32xf32> -> vector<32x32xf32>
    %c0_80 = arith.constant 0 : index
    %c0_81 = arith.constant 0 : index
    %355 = vector.load %arg11[%c0_80, %c0_81] : memref<32x32xf32, #tpu.memory_space<vmem>>, vector<32x32xf32>
    tpu.vector_store %arg11[%c0_80, %c0_81], %354 {strides = array<i32>} : memref<32x32xf32, #tpu.memory_space<vmem>>, vector<32x32xf32>,
    return
  }
}

</mosaic_0001>

<bundles_post_ra>
// kernel: tpu_custom_call.1
= control target key start
LH: loop header
LB: loop body
LE: loop exit
PB: predicated region body
PF: predicated region fallthrough
CT: control target
= control target key end

     0   :  { %17 = vsyncpa [#allocation4], 0  ;;  %s4273_s0 = inlined_call_operand.vmem [shape: f32[64,64], index: 0, kind: input, shape index: {}]   ;;  %s4274_s1 = inlined_call_operand.hbm [shape: f32[32,32], index: 1, kind: input, shape index: {}, may-alias: {1,11}]   ;;  %s4275_s2 = inlined_call_operand.hbm [shape: f32[64,128], index: 2, kind: input, shape index: {}]   ;;  %s4276_s3 = inlined_call_operand.hbm [shape: f32[32,128], index: 3, kind: input, shape index: {}]   ;;  %s4277_s4 = inlined_call_operand.vmem [shape: f32[1,128], index: 4, kind: input, shape index: {}]   ;;  %s4278_s5 = inlined_call_operand.hbm [shape: f32[32,128], index: 5, kind: input, shape index: {}]   ;;  %s4279_s6 = inlined_call_operand.hbm [shape: f32[32,128], index: 6, kind: input, shape index: {}]   ;;  %s4280_s7 = inlined_call_operand.vmem [shape: f32[1,128], index: 7, kind: input, shape index: {}]   ;;  %s4281_s8 = inlined_call_operand.hbm [shape: f32[32,128], index: 8, kind: input, shape index: {}]   ;;  %s4282_s9 = inlined_call_operand.vmem [shape: f32[1,128], index: 9, kind: input, shape index: {}]   ;;  %s4283_s10 = inlined_call_operand.hbm [shape: f32[64,128], index: 10, kind: output, shape index: {0}]   ;;  %s4284_s11 = inlined_call_operand.hbm [shape: f32[32,32], index: 11, kind: output, shape index: {1}, may-alias: {1,11}]  }
   0x1   :  { %18 = vsyncpa [#allocation7], 0 }
   0x2   :  { %19 = vsyncpa [#allocation10], 0 }
   0x3   :  { %20 = vsyncpa [#allocation13], 0 }
   0x4   :  { %21 = vsyncpa [#allocation5], 0 }
   0x5   :  { %22 = vsyncpa [#allocation16], 0  ;;  %s3629_s17 = smov [#allocation6]   ;;  %s3630_s19 = smov [#allocation9]  }
   0x6   :  { %s42_s18 = sshll.u32 %s3629_s17, 4  ;;  %s68_s20 = sshll.u32 %s3630_s19, 4  ;;  %s43_s18 = int_to_ptr.vmem [resolvable:$true] %s42_s18  ;;  %s69_s20 = int_to_ptr.vmem [resolvable:$true] %s68_s20 }
   0x7   :  { %s3465_s21 = scalar_lea.vmem %s43_s18, 1024  ;;  %p3470_p1 = scmp.lt.s32.totalorder %s43_s18, %s43_s18 }
   0x8   :  { %p3466_p0 = scmp.ne.s32.totalorder %s43_s18, %s3465_s21  ;;  %p3471_p2 = scmp.lt.s32.totalorder %s3465_s21, %s3465_s21 }
   0xa   :  { %p3472_p3 = por %p3471_p2, %p3470_p1 }
   0xc   :  { %p3473_p4 = pnand %p3472_p3, %p3466_p0 }
   0xe   :  { %3476 = shalt.err (!%p3473_p4)
}
   0xf   :  { %s3631_s22 = smov 128   ;;  %s3632_s23 = smov 8  }
  0x10   :  { %48 = dma.hbm_to_vmem [thread:$0]  %s4275_s2, 1024, %s43_s18, [#allocation7], %s3631_s22, %s3631_s22, %s3632_s23  }
  0x11   :  { %s3485_s26 = scalar_lea.vmem %s69_s20, 512  ;;  %p3490_p6 = scmp.lt.s32.totalorder %s69_s20, %s69_s20 }
  0x12   :  { %p3486_p5 = scmp.ne.s32.totalorder %s69_s20, %s3485_s26  ;;  %p3491_p7 = scmp.lt.s32.totalorder %s3485_s26, %s3485_s26 }
  0x14   :  { %p3492_p8 = por %p3491_p7, %p3490_p6 }
  0x16   :  { %p3493_p9 = pnand %p3492_p8, %p3486_p5 }
  0x18   :  { %3496 = shalt.err (!%p3493_p9)
}
  0x19   :  { %74 = dma.hbm_to_vmem [thread:$0]  %s4278_s5, 512, %s69_s20, [#allocation10], %s3631_s22, %s3631_s22, %s3632_s23  }
  0x1a   :  { %s3633_s29 = smov [#allocation3]   ;;  %s3634_s12 = smov [#allocation8]  }
  0x1b   :  { %s30_s30 = sshll.u32 %s3633_s29, 4  ;;  %s54_s13 = sshll.u32 %s3634_s12, 4  ;;  %s31_s30 = int_to_ptr.vmem [resolvable:$true] %s30_s30  ;;  %s55_s13 = int_to_ptr.vmem [resolvable:$true] %s54_s13 }
  0x1c   :  { %s3505_s2 = scalar_lea.vmem %s31_s30, 512  ;;  %p3510_p11 = scmp.lt.s32.totalorder %s31_s30, %s31_s30 }
  0x1d   :  { %p3506_p10 = scmp.ne.s32.totalorder %s31_s30, %s3505_s2  ;;  %p3511_p12 = scmp.lt.s32.totalorder %s3505_s2, %s3505_s2 }
  0x1f   :  { %p3512_p13 = por %p3511_p12, %p3510_p11 }
  0x21   :  { %p3513_p0 = pnand %p3512_p13, %p3506_p10 }
  0x23   :  { %3516 = shalt.err (!%p3513_p0)
}
  0x24   :  { %36 = dma.hbm_to_vmem [thread:$0]  %s4274_s1, 512, %s31_s30, [#allocation4], %s3631_s22, %s3631_s22, %s3632_s23  }
  0x25   :  { %s3525_s5 = scalar_lea.vmem %s55_s13, 512  ;;  %p3530_p2 = scmp.lt.s32.totalorder %s55_s13, %s55_s13 }
  0x26   :  { %p3526_p1 = scmp.ne.s32.totalorder %s55_s13, %s3525_s5  ;;  %p3531_p3 = scmp.lt.s32.totalorder %s3525_s5, %s3525_s5 }
  0x28   :  { %p3532_p4 = por %p3531_p3, %p3530_p2 }
  0x2a   :  { %p3533_p5 = pnand %p3532_p4, %p3526_p1 }
  0x2c   :  { %3536 = shalt.err (!%p3533_p5)
}
  0x2d   :  { %60 = dma.hbm_to_vmem [thread:$0]  %s4276_s3, 512, %s55_s13, [#allocation7], %s3631_s22, %s3631_s22, %s3632_s23  }
  0x2e   :  { %s3635_s18 = smov [#allocation11]   ;;  %s3636_s20 = smov [#allocation12]  }
  0x2f   :  { %s80_s19 = sshll.u32 %s3635_s18, 4  ;;  %s94_s21 = sshll.u32 %s3636_s20, 4  ;;  %s81_s19 = int_to_ptr.vmem [resolvable:$true] %s80_s19  ;;  %s95_s21 = int_to_ptr.vmem [resolvable:$true] %s94_s21 }
  0x30   :  { %s3545_s1 = scalar_lea.vmem %s81_s19, 512  ;;  %p3550_p7 = scmp.lt.s32.totalorder %s81_s19, %s81_s19 }
  0x31   :  { %p3546_p6 = scmp.ne.s32.totalorder %s81_s19, %s3545_s1  ;;  %p3551_p8 = scmp.lt.s32.totalorder %s3545_s1, %s3545_s1 }
  0x33   :  { %p3552_p9 = por %p3551_p8, %p3550_p7 }
  0x35   :  { %p3553_p10 = pnand %p3552_p9, %p3546_p6 }
  0x37   :  { %3556 = shalt.err (!%p3553_p10)
}
  0x38   :  { %86 = dma.hbm_to_vmem [thread:$0]  %s4279_s6, 512, %s81_s19, [#allocation10], %s3631_s22, %s3631_s22, %s3632_s23  }
  0x39   :  { %s3565_s3 = scalar_lea.vmem %s95_s21, 512  ;;  %p3570_p12 = scmp.lt.s32.totalorder %s95_s21, %s95_s21 }
  0x3a   :  { %p3566_p11 = scmp.ne.s32.totalorder %s95_s21, %s3565_s3  ;;  %p3571_p13 = scmp.lt.s32.totalorder %s3565_s3, %s3565_s3 }
  0x3c   :  { %p3572_p0 = por %p3571_p13, %p3570_p12 }
  0x3e   :  { %p3573_p1 = pnand %p3572_p0, %p3566_p11 }
  0x40   :  { %3576 = shalt.err (!%p3573_p1)
}
  0x41   :  { %100 = dma.hbm_to_vmem [thread:$0]  %s4281_s8, 512, %s95_s21, [#allocation13], %s3631_s22, %s3631_s22, %s3632_s23  }
  0x42   :  { %3617 = dma.done.wait [#allocation4], 512  }
  0x43   :  { %3618 = vsyncadd [#allocation4], 4294966784 }
  0x44   :  { %3619 = dma.done.wait [#allocation7], 1536  }
  0x45   :  { %3620 = vsyncadd [#allocation7], 4294965760 }
  0x46   :  { %3621 = dma.done.wait [#allocation10], 1024  }
  0x47   :  { %3622 = vsyncadd [#allocation10], 4294966272 }
  0x48   :  { %3623 = dma.done.wait [#allocation13], 512  }
  0x49   :  { %3624 = vsyncadd [#allocation13], 4294966784  ;;  %v3637_v0 = vmov 0.0   ;;  %vm3638_vm0 = vmmov 0   ;;  %v149_v1 = vld [vmem:[#allocation6 + $0x38] sm:$0xff]  ;;  %v148_v2 = vld [vmem:[#allocation6 + $0x30] sm:$0xff] }
  0x4a   :  { %2997 = vmatprep.subr.mxu1 %v3637_v0  ;;  %3005 = vmatprep.mubr.msk.f32.mxu1 %vm3638_vm0, %v3637_v0  ;;  %vm157_vm1 = vcmask 523264   ;;  %v147_v3 = vld [vmem:[#allocation6 + $0x28] sm:$0xff]  ;;  %v134_v4 = vld [vmem:[%s4273_s0] sm:$0xff]  ;;  %v145_v6 = vld [vmem:[#allocation6 + $0x18] sm:$0xff]  ;;  %vm291_vm2 = vcmask 261120   ;;  %s3640_s1 = smov 64  }
  0x4b   :  { %2958 = vmatprep.subr.mxu0 %v149_v1  ;;  %2974 = vmatprep.mubr.msk.f32.mxu0 %vm157_vm1, %v134_v4  ;;  %v146_v5 = vld [vmem:[#allocation6 + $0x20] sm:$0xff]  ;;  %v144_v7 = vld [vmem:[#allocation6 + $0x10] sm:$0xff]  ;;  %v143_v8 = vld [vmem:[#allocation6 + $0x8] sm:$0xff] }
  0x4c   :  { %2959 = vmatpush3.msra.mxu0 %v149_v1  ;;  %v142_v9 = vld [vmem:[#allocation6] sm:$0xff]  ;;  %v135_v10 = vld [vmem:[%s4273_s0 + $0x8] sm:$0xff]  ;;  %v3749_v11 = vld [vmem:[#allocation8 + $0x18] sm:$0xff] }
  0x4d   :  { %2960 = vmatprep.subr.mxu0 %v148_v2  ;;  %v136_v12 = vld [vmem:[%s4273_s0 + $0x10] sm:$0xff]  ;;  %v137_v14 = vld [vmem:[%s4273_s0 + $0x18] sm:$0xff]  ;;  %v138_v15 = vld [vmem:[%s4273_s0 + $0x20] sm:$0xff] }
  0x4e   :  { %2961 = vmatpush3.msra.mxu0 %v148_v2  ;;  %v3756_v13 = vld [vmem:[#allocation8 + $0x10] sm:$0xff]  ;;  %v3767_v16 = vld [vmem:[#allocation8 + $0x8] sm:$0xff]  ;;  %v3772_v17 = vld [vmem:[#allocation8] sm:$0xff] }
  0x4f   :  { %2962 = vmatprep.subr.mxu0 %v147_v3  ;;  %v139_v18 = vld [vmem:[%s4273_s0 + $0x28] sm:$0xff]  ;;  %v140_v19 = vld [vmem:[%s4273_s0 + $0x30] sm:$0xff]  ;;  %v141_v20 = vld [vmem:[%s4273_s0 + $0x38] sm:$0xff] }
  0x50   :  { %2963 = vmatpush3.msra.mxu0 %v147_v3  ;;  %v287_v21 = vld [vmem:[#allocation3] sm:$0xff]  ;;  %v288_v43 = vld [vmem:[#allocation3 + $0x8] sm:$0xff]  ;;  %v3827_v54 = vld [vmem:[#allocation11 + $0x18] sm:$0xff] }
  0x51   :  { %2964 = vmatprep.subr.mxu0 %v146_v5  ;;  %v2743_v22 = vld [vmem:[%s4277_s4] ss:$0 sm:$0xff]  ;;  %s3639_s4 = smov 32   ;;  %v3829_v55 = vld [vmem:[#allocation11 + $0x10] sm:$0xff]  ;;  %2998 = vmatpush3.msra.mxu1 %v3827_v54  ;;  %v3833_v56 = vld [vmem:[#allocation11 + $0x8] sm:$0xff] }
  0x52   :  { %2965 = vmatpush3.msra.mxu0 %v146_v5  ;;  %2999 = vmatprep.subr.mxu1 %v3637_v0  ;;  %v3837_v57 = vld [vmem:[#allocation11] sm:$0xff]  ;;  %v289_v58 = vld [vmem:[#allocation3 + $0x10] sm:$0xff]  ;;  %v3841_v59 = vld [vmem:[#allocation9 + $0x18] sm:$0xff] }
  0x53   :  { %2966 = vmatprep.subr.mxu0 %v145_v6  ;;  %3000 = vmatpush3.msra.mxu1 %v3829_v55  ;;  %v3846_v60 = vld [vmem:[#allocation9 + $0x10] sm:$0xff]  ;;  %v3852_v62 = vld [vmem:[#allocation9 + $0x8] sm:$0xff]  ;;  %v3857_v63 = vld [vmem:[#allocation9] sm:$0xff] }
  0x54   :  { %2967 = vmatpush3.msra.mxu0 %v145_v6  ;;  %3001 = vmatprep.subr.mxu1 %v3637_v0  ;;  %v3889_v6 = vld [vmem:[%s4280_s7] ss:$0 sm:$0xff] }
  0x55   :  { %2968 = vmatprep.subr.mxu0 %v144_v7  ;;  %3002 = vmatpush3.msra.mxu1 %v3833_v56 }
  0x56   :  { %2969 = vmatpush3.msra.mxu0 %v144_v7  ;;  %3003 = vmatprep.subr.mxu1 %v3637_v0 }
  0x57   :  { %2970 = vmatprep.subr.mxu0 %v143_v8  ;;  %3004 = vmatpush3.msra.mxu1 %v3837_v57 }
  0x58   :  { %2971 = vmatpush3.msra.mxu0 %v143_v8  ;;  %3006 = vmatmul.mubr.msk.f32.vlgmr.msra.gmra.mxu1 %vm291_vm2, %v289_v58 }
  0x59   :  { %2972 = vmatprep.subr.mxu0 %v142_v9  ;;  %3008 = vmatprep.subr.mxu1 %v3637_v0 }
  0x5a   :  { %2973 = vmatpush3.msra.mxu0 %v142_v9  ;;  %3009 = vmatpush3.msra.mxu1 %v3841_v59 }
  0x5b   :  { %2975 = vmatmul.mubr.msk.f32.vlgmr.msra.gmra.mxu0 %vm157_vm1, %v135_v10  ;;  %2986 = vmatprep.subr.mxu0 %v3637_v0 }
  0x5c   :  { %2987 = vmatpush3.msra.mxu0 %v3749_v11  ;;  %2977 = vmatprep.mubr.msk.f32.mxu0 %vm157_vm1, %v136_v12 }
  0x5d   :  { %2988 = vmatprep.subr.mxu0 %v3637_v0  ;;  %3016 = vmatprep.mubr.msk.f32.mxu1 %vm3638_vm0, %v3637_v0 }
  0x5e   :  { %2989 = vmatpush3.msra.mxu0 %v3756_v13  ;;  %3010 = vmatprep.subr.mxu1 %v3637_v0 }
  0x5f   :  { %2978 = vmatmul.mubr.msk.f32.gmra.mxu0 %vm157_vm1, %v137_v14  ;;  %2990 = vmatprep.subr.mxu0 %v3637_v0 }
  0x60   :  { %2980 = vmatprep.mubr.msk.f32.mxu0 %vm157_vm1, %v138_v15  ;;  %2991 = vmatpush3.msra.mxu0 %v3767_v16 }
  0x61   :  { %2992 = vmatprep.subr.mxu0 %v3637_v0  ;;  %3011 = vmatpush3.msra.mxu1 %v3846_v60 }
  0x62   :  { %2993 = vmatpush3.msra.mxu0 %v3772_v17  ;;  %3012 = vmatprep.subr.mxu1 %v3637_v0 }
  0x63   :  { %2981 = vmatmul.mubr.msk.f32.gmra.mxu0 %vm157_vm1, %v139_v18  ;;  %3019 = vmatprep.subr.mxu0 %v3637_v0 }
  0x64   :  { %2983 = vmatprep.mubr.msk.f32.mxu0 %vm157_vm1, %v140_v19  ;;  %3013 = vmatpush3.msra.mxu1 %v3852_v62 }
  0x65   :  { %3014 = vmatprep.subr.mxu1 %v3637_v0 }
  0x66   :  { %3015 = vmatpush3.msra.mxu1 %v3857_v63 }
  0x67   :  { %2984 = vmatmul.mubr.msk.f32.gmra.mxu0 %vm157_vm1, %v141_v20  ;;  %3030 = vmatprep.subr.mxu1 %v3637_v0  ;;  %v290_v20 = vld [vmem:[#allocation3 + $0x18] sm:$0xff] }
  0x68   :  { %2994 = vmatprep.mubr.msk.f32.mxu0 %vm3638_vm0, %v3637_v0 }
  0x6b   :  { %2995 = vmatmul.mubr.msk.f32.vlgmr.msra.gmra.mxu0 %vm291_vm2, %v287_v21 }
  0x6c   :  { %3020 = vmatpush3.msra.mxu0 %v3749_v11  ;;  %3027 = vmatprep.mubr.msk.f32.mxu0 %vm3638_vm0, %v3637_v0 }
  0x6d   :  { %3021 = vmatprep.subr.mxu0 %v3637_v0 }
  0x6e   :  { %3022 = vmatpush3.msra.mxu0 %v3756_v13 }
  0x6f   :  { %3023 = vmatprep.subr.mxu0 %v3637_v0 }
  0x70   :  { %3024 = vmatpush3.msra.mxu0 %v3767_v16 }
  0x71   :  { %3025 = vmatprep.subr.mxu0 %v3637_v0 }
  0x72   :  { %3026 = vmatpush3.msra.mxu0 %v3772_v17 }
  0x73   :  { %3041 = vmatprep.subr.mxu0 %v3637_v0 }
 0x118   :  { %v463_v3 = vpop.f32.mrf.mxu1 }
 0x11a   :  { %v3007_v4 = vpop.f32.mrf.mxu1 }
 0x11b   :  { %v2976_v23 = vpop.f32.mrf.mxu0 }
 0x11c   :  { %v3807_v24 = vadd.f32 %v2976_v23, %v2743_v22 }
 0x11d   :  { %v248_v25 = vpop.f32.mrf.mxu0 }
 0x11e   :  { %v249_v37 = vadd.f32 %v2743_v22, %v248_v25 }
 0x11f   :  { %v2979_v26 = vpop.f32.mrf.mxu0 }
 0x120   :  { %v3809_v27 = vadd.f32 %v2979_v26, %v2743_v22 }
 0x121   :  { %v258_v28 = vpop.f32.mrf.mxu0 }
 0x122   :  { %v3811_v29 = vadd.f32 %v2743_v22, %v258_v28 }
 0x123   :  { %v2982_v30 = vpop.f32.mrf.mxu0 }
 0x124   :  { %v3813_v31 = vadd.f32 %v2982_v30, %v2743_v22 }
 0x125   :  { %v268_v32 = vpop.f32.mrf.mxu0 }
 0x126   :  { %v3815_v33 = vadd.f32 %v2743_v22, %v268_v32 }
 0x127   :  { %v2985_v34 = vpop.f32.mrf.mxu0 }
 0x128   :  { %v3817_v35 = vadd.f32 %v2985_v34, %v2743_v22 }
 0x129   :  { %v278_v36 = vpop.f32.mrf.mxu0 }
 0x12a   :  { %v3819_v38 = vadd.f32 %v2743_v22, %v278_v36 }
 0x12b   :  { %v361_v39 = vpop.f32.mrf.mxu0 }
 0x12c   :  { %v365_v40 = vadd.f32 %v361_v39, %v249_v37 }
 0x12d   :  { %v2996_v41 = vpop.f32.mrf.mxu0 }
 0x12e   :  { %3284 = vtanh.f32 %v365_v40  ;;  %v2753_v44 = vmul.f32 -1.442695, %v365_v40 }
 0x130   :  { %3286 = vpow2.f32 %v2753_v44 }
 0x13b   :  { %v3285_v42 = vpop.eup %3284 }
 0x13c   :  { %379 = vrot.lane.b32.xlu0 %v3285_v42, %s3639_s4 }
 0x13d   :  { %v3287_v45 = vpop.eup %3286 }
 0x13e   :  { %v369_v46 = vadd.f32 1.0, %v3287_v45 }
 0x140   :  { %374 = vrot.lane.b32.xlu0 %v288_v43, %s3639_s4  ;;  %3288 = vrcp.f32 %v369_v46 }
 0x14d   :  { %v3289_v47 = vpop.eup %3288 }
 0x1ae   :  { %v380_v48 = vpop.permute.xlu0 %379 }
 0x1af   :  { %v382_v49 = vmul.f32 %v3289_v47, %v380_v48 }
 0x1b1   :  { %384 = vrot.lane.b32.xlu1 %v382_v49, %s3639_s4 }
 0x1b2   :  { %v375_v50 = vpop.permute.xlu0 %374 }
 0x1b3   :  { %v377_v51 = vmul.f32 %v3289_v47, %v375_v50 }
 0x223   :  { %v385_v52 = vpop.permute.xlu1 %384 }
 0x224   :  { %v3824_v53 = vadd.f32 %v385_v52, %v377_v51 }
 0x226   :  { %3290 = vtanh.f32 %v3824_v53 }
 0x233   :  { %v3291_v61 = vpop.eup %3290 }
 0x234   :  { %390 = vrot.lane.b32.xlu1 %v3291_v61, %s3639_s4 }
 0x2a6   :  { %v391_v1 = vpop.permute.xlu1 %390 }
 0x2a7   :  { %v393_v2 = vmul.f32 %v3289_v47, %v391_v1 }
 0x2a9   :  { %468 = vrot.lane.b32.xlu0 %v393_v2, %s3640_s1 }
 0x31b   :  { %v469_v5 = vpop.permute.xlu0 %468 }
 0x31c   :  { %3017 = vmatmul.mubr.msk.f32.vlgmr.msra.gmra.mxu1 %vm291_vm2, %v469_v5  ;;  %3028 = vmatmul.mubr.msk.f32.vlgmr.msra.gmra.mxu0 %vm291_vm2, %v469_v5 }
 0x31d   :  { %3042 = vmatpush3.msra.mxu0 %v3841_v59  ;;  %3031 = vmatpush3.msra.mxu1 %v3827_v54 }
 0x31e   :  { %3043 = vmatprep.subr.mxu0 %v3637_v0  ;;  %3032 = vmatprep.subr.mxu1 %v3637_v0 }
 0x31f   :  { %3044 = vmatpush3.msra.mxu0 %v3846_v60  ;;  %3033 = vmatpush3.msra.mxu1 %v3829_v55 }
 0x320   :  { %3045 = vmatprep.subr.mxu0 %v3637_v0  ;;  %3034 = vmatprep.subr.mxu1 %v3637_v0 }
 0x321   :  { %3046 = vmatpush3.msra.mxu0 %v3852_v62  ;;  %3035 = vmatpush3.msra.mxu1 %v3833_v56 }
 0x322   :  { %3047 = vmatprep.subr.mxu0 %v3637_v0  ;;  %3036 = vmatprep.subr.mxu1 %v3637_v0 }
 0x323   :  { %3048 = vmatpush3.msra.mxu0 %v3857_v63  ;;  %3049 = vmatprep.mubr.msk.f32.mxu0 %vm3638_vm0, %v3637_v0 }
 0x324   :  { %3037 = vmatpush3.msra.mxu1 %v3837_v57  ;;  %3038 = vmatprep.mubr.msk.f32.mxu1 %vm3638_vm0, %v3637_v0 }
 0x325   :  { %3052 = vmatprep.subr.mxu1 %v3637_v0  ;;  %3063 = vmatprep.subr.mxu0 %v3637_v0 }
 0x3dc   :  { %v538_v7 = vpop.f32.mrf.mxu1  ;;  %v648_v8 = vpop.f32.mrf.mxu0 }
 0x3dd   :  { %v539_v9 = vadd.f32 %v538_v7, %v463_v3  ;;  %v652_v10 = vadd.f32 %v648_v8, %v3807_v24 }
 0x3de   :  { %v3018_v12 = vpop.f32.mrf.mxu1  ;;  %v3029_v14 = vpop.f32.mrf.mxu0 }
 0x3df   :  { %v548_v15 = vadd.f32 %v3889_v6, %v539_v9  ;;  %3292 = vtanh.f32 %v652_v10  ;;  %v2759_v21 = vmul.f32 -1.442695, %v652_v10 }
 0x3e1   :  { %3294 = vtanh.f32 %v548_v15  ;;  %v2757_v22 = vmul.f32 -1.442695, %v548_v15 }
 0x3e2   :  { %3296 = vpow2.f32 %v2759_v21 }
 0x3e3   :  { %3298 = vpow2.f32 %v2757_v22 }
 0x3ec   :  { %v3293_v18 = vpop.eup %3292 }
 0x3ed   :  { %662 = vrot.lane.b32.xlu0 %v3293_v18, %s3639_s4 }
 0x3ee   :  { %v3295_v19 = vpop.eup %3294 }
 0x3ef   :  { %562 = vrot.lane.b32.xlu1 %v3295_v19, %s3639_s4  ;;  %v3297_v23 = vpop.eup %3296 }
 0x3f0   :  { %v3299_v24 = vpop.eup %3298  ;;  %v656_v25 = vadd.f32 1.0, %v3297_v23 }
 0x3f1   :  { %v552_v26 = vadd.f32 1.0, %v3299_v24 }
 0x3f2   :  { %3300 = vrcp.f32 %v656_v25 }
 0x3f3   :  { %557 = vrot.lane.b32.xlu1 %v290_v20, %s3639_s4  ;;  %3302 = vrcp.f32 %v552_v26 }
 0x3ff   :  { %v3301_v28 = vpop.eup %3300 }
 0x400   :  { %v3303_v34 = vpop.eup %3302  ;;  %v660_v40 = vmul.f32 %v3301_v28, %v3824_v53 }
 0x45f   :  { %v663_v30 = vpop.permute.xlu0 %662 }
 0x460   :  { %v665_v32 = vmul.f32 %v3301_v28, %v663_v30 }
 0x461   :  { %v563_v36 = vpop.permute.xlu1 %562 }
 0x462   :  { %v565_v37 = vmul.f32 %v3303_v34, %v563_v36  ;;  %667 = vrot.lane.b32.xlu1 %v665_v32, %s3639_s4 }
 0x464   :  { %567 = vrot.lane.b32.xlu0 %v565_v37, %s3639_s4 }
 0x465   :  { %v558_v39 = vpop.permute.xlu1 %557 }
 0x466   :  { %v560_v42 = vmul.f32 %v3303_v34, %v558_v39 }
 0x4d4   :  { %v668_v41 = vpop.permute.xlu1 %667 }
 0x4d5   :  { %v3899_v43 = vadd.f32 %v668_v41, %v660_v40 }
 0x4d6   :  { %v568_v44 = vpop.permute.xlu0 %567 }
 0x4d7   :  { %3304 = vtanh.f32 %v3899_v43  ;;  %v3902_v45 = vadd.f32 %v568_v44, %v560_v42 }
 0x4d9   :  { %3306 = vtanh.f32 %v3902_v45 }
 0x4e4   :  { %v3305_v46 = vpop.eup %3304 }
 0x4e5   :  { %673 = vrot.lane.b32.xlu1 %v3305_v46, %s3639_s4 }
 0x4e6   :  { %v3307_v47 = vpop.eup %3306 }
 0x4e7   :  { %573 = vrot.lane.b32.xlu0 %v3307_v47, %s3639_s4 }
 0x557   :  { %v674_v48 = vpop.permute.xlu1 %673 }
 0x558   :  { %v676_v49 = vmul.f32 %v3301_v28, %v674_v48 }
 0x559   :  { %v574_v50 = vpop.permute.xlu0 %573 }
 0x55a   :  { %v576_v51 = vmul.f32 %v3303_v34, %v574_v50  ;;  %750 = vrot.lane.b32.xlu1 %v676_v49, %s3640_s1 }
 0x55c   :  { %578 = vrot.lane.b32.xlu0 %v576_v51, %s3640_s1 }
 0x5cc   :  { %v751_v52 = vpop.permute.xlu1 %750 }
 0x5cd   :  { %3050 = vmatmul.mubr.msk.f32.vlgmr.msra.gmra.mxu0 %vm291_vm2, %v751_v52 }
 0x5ce   :  { %v579_v53 = vpop.permute.xlu0 %578  ;;  %3064 = vmatpush3.msra.mxu0 %v3827_v54  ;;  %3071 = vmatprep.mubr.msk.f32.mxu0 %vm3638_vm0, %v3637_v0 }
 0x5cf   :  { %581 = vst.msk [vmem:[#allocation2] sm:$0xff] %vm291_vm2, %v579_v53  ;;  %3039 = vmatmul.mubr.msk.f32.vlgmr.msra.gmra.mxu1 %vm291_vm2, %v579_v53  ;;  %3065 = vmatprep.subr.mxu0 %v3637_v0 }
 0x5d0   :  { %3053 = vmatpush3.msra.mxu1 %v3749_v11  ;;  %3060 = vmatprep.mubr.msk.f32.mxu1 %vm3638_vm0, %v3637_v0 }
 0x5d1   :  { %3054 = vmatprep.subr.mxu1 %v3637_v0  ;;  %3066 = vmatpush3.msra.mxu0 %v3829_v55 }
 0x5d2   :  { %3055 = vmatpush3.msra.mxu1 %v3756_v13  ;;  %3067 = vmatprep.subr.mxu0 %v3637_v0 }
 0x5d3   :  { %3056 = vmatprep.subr.mxu1 %v3637_v0  ;;  %3068 = vmatpush3.msra.mxu0 %v3833_v56 }
 0x5d4   :  { %3057 = vmatpush3.msra.mxu1 %v3767_v16  ;;  %3069 = vmatprep.subr.mxu0 %v3637_v0 }
 0x5d5   :  { %3058 = vmatprep.subr.mxu1 %v3637_v0  ;;  %3070 = vmatpush3.msra.mxu0 %v3837_v57 }
 0x5d6   :  { %3059 = vmatpush3.msra.mxu1 %v3772_v17  ;;  %3085 = vmatprep.subr.mxu0 %v3637_v0 }
 0x5d7   :  { %3061 = vmatmul.mubr.msk.f32.vlgmr.msra.gmra.mxu1 %vm291_vm2, %v751_v52  ;;  %3074 = vmatprep.subr.mxu1 %v3637_v0 }
 0x5d8   :  { %3075 = vmatpush3.msra.mxu1 %v3841_v59  ;;  %3082 = vmatprep.mubr.msk.f32.mxu1 %vm3638_vm0, %v3637_v0 }
 0x5d9   :  { %3076 = vmatprep.subr.mxu1 %v3637_v0 }
 0x5da   :  { %3077 = vmatpush3.msra.mxu1 %v3846_v60 }
 0x5db   :  { %3078 = vmatprep.subr.mxu1 %v3637_v0 }
 0x5dc   :  { %3079 = vmatpush3.msra.mxu1 %v3852_v62 }
 0x5dd   :  { %3080 = vmatprep.subr.mxu1 %v3637_v0 }
 0x5de   :  { %3081 = vmatpush3.msra.mxu1 %v3857_v63 }
 0x5df   :  { %3096 = vmatprep.subr.mxu1 %v3637_v0 }
 0x68d   :  { %v820_v58 = vpop.f32.mrf.mxu0 }
 0x68f   :  { %v745_v61 = vpop.f32.mrf.mxu1  ;;  %v3051_v1 = vpop.f32.mrf.mxu0 }
 0x690   :  { %v821_v2 = vadd.f32 %v820_v58, %v745_v61 }
 0x691   :  { %v3040_v3 = vpop.f32.mrf.mxu1 }
 0x692   :  { %v824_v4 = vadd.f32 %v3889_v6, %v821_v2 }
 0x694   :  { %3308 = vtanh.f32 %v824_v4  ;;  %v2762_v12 = vmul.f32 -1.442695, %v824_v4 }
 0x697   :  { %v920_v5 = vpop.f32.mrf.mxu1 }
 0x698   :  { %v924_v7 = vadd.f32 %v920_v5, %v3811_v29 }
 0x699   :  { %v3062_v8 = vpop.f32.mrf.mxu1 }
 0x69a   :  { %3310 = vtanh.f32 %v924_v7  ;;  %v2764_v14 = vmul.f32 -1.442695, %v924_v7 }
 0x69b   :  { %3312 = vpow2.f32 %v2762_v12 }
 0x69c   :  { %3314 = vpow2.f32 %v2764_v14 }
 0x6a1   :  { %v3309_v9 = vpop.eup %3308 }
 0x6a2   :  { %834 = vrot.lane.b32.xlu0 %v3309_v9, %s3639_s4 }
 0x6a7   :  { %v3311_v10 = vpop.eup %3310 }
 0x6a8   :  { %934 = vrot.lane.b32.xlu1 %v3311_v10, %s3639_s4  ;;  %v3313_v15 = vpop.eup %3312 }
 0x6a9   :  { %v828_v18 = vadd.f32 1.0, %v3313_v15  ;;  %v3315_v19 = vpop.eup %3314 }
 0x6aa   :  { %v928_v20 = vadd.f32 1.0, %v3315_v19 }
 0x6ab   :  { %3316 = vrcp.f32 %v828_v18 }
 0x6ac   :  { %3318 = vrcp.f32 %v928_v20 }
 0x6b8   :  { %v3317_v21 = vpop.eup %3316 }
 0x6b9   :  { %v3319_v23 = vpop.eup %3318  ;;  %v832_v26 = vmul.f32 %v3317_v21, %v3902_v45 }
 0x6ba   :  { %v932_v32 = vmul.f32 %v3319_v23, %v3899_v43 }
 0x714   :  { %v835_v29 = vpop.permute.xlu0 %834 }
 0x715   :  { %v837_v22 = vmul.f32 %v3317_v21, %v835_v29 }
 0x717   :  { %839 = vrot.lane.b32.xlu0 %v837_v22, %s3639_s4 }
 0x71a   :  { %v935_v24 = vpop.permute.xlu1 %934 }
 0x71b   :  { %v937_v25 = vmul.f32 %v3319_v23, %v935_v24 }
 0x71d   :  { %939 = vrot.lane.b32.xlu1 %v937_v25, %s3639_s4 }
 0x789   :  { %v840_v28 = vpop.permute.xlu0 %839 }
 0x78a   :  { %v3950_v30 = vadd.f32 %v840_v28, %v832_v26 }
 0x78c   :  { %3320 = vtanh.f32 %v3950_v30 }
 0x78f   :  { %v940_v34 = vpop.permute.xlu1 %939 }
 0x790   :  { %v3954_v36 = vadd.f32 %v940_v34, %v932_v32 }
 0x792   :  { %3322 = vtanh.f32 %v3954_v36 }
 0x799   :  { %v3321_v37 = vpop.eup %3320 }
 0x79a   :  { %845 = vrot.lane.b32.xlu0 %v3321_v37, %s3639_s4 }
 0x79f   :  { %v3323_v39 = vpop.eup %3322 }
 0x7a0   :  { %945 = vrot.lane.b32.xlu1 %v3323_v39, %s3639_s4 }
 0x80c   :  { %v846_v40 = vpop.permute.xlu0 %845 }
 0x80d   :  { %v848_v41 = vmul.f32 %v3317_v21, %v846_v40 }
 0x80f   :  { %850 = vrot.lane.b32.xlu0 %v848_v41, %s3640_s1 }
 0x812   :  { %v946_v42 = vpop.permute.xlu1 %945 }
 0x813   :  { %v948_v44 = vmul.f32 %v3319_v23, %v946_v42 }
 0x815   :  { %1022 = vrot.lane.b32.xlu1 %v948_v44, %s3640_s1 }
 0x881   :  { %v851_v43 = vpop.permute.xlu0 %850 }
 0x882   :  { %853 = vst.msk [vmem:[#allocation2 + $0x8] sm:$0xff] %vm291_vm2, %v851_v43  ;;  %3072 = vmatmul.mubr.msk.f32.vlgmr.msra.gmra.mxu0 %vm291_vm2, %v851_v43 }
 0x883   :  { %3086 = vmatpush3.msra.mxu0 %v3749_v11  ;;  %3093 = vmatprep.mubr.msk.f32.mxu0 %vm3638_vm0, %v3637_v0 }
 0x884   :  { %3087 = vmatprep.subr.mxu0 %v3637_v0 }
 0x885   :  { %3088 = vmatpush3.msra.mxu0 %v3756_v13 }
 0x886   :  { %3089 = vmatprep.subr.mxu0 %v3637_v0 }
 0x887   :  { %v1023_v45 = vpop.permute.xlu1 %1022  ;;  %3090 = vmatpush3.msra.mxu0 %v3767_v16 }
 0x888   :  { %3083 = vmatmul.mubr.msk.f32.vlgmr.msra.gmra.mxu1 %vm291_vm2, %v1023_v45  ;;  %3091 = vmatprep.subr.mxu0 %v3637_v0 }
 0x889   :  { %3092 = vmatpush3.msra.mxu0 %v3772_v17  ;;  %3097 = vmatpush3.msra.mxu1 %v3827_v54 }
 0x88a   :  { %3094 = vmatmul.mubr.msk.f32.vlgmr.msra.gmra.mxu0 %vm291_vm2, %v1023_v45  ;;  %3107 = vmatprep.subr.mxu0 %v3637_v0 }
 0x88b   :  { %3098 = vmatprep.subr.mxu1 %v3637_v0  ;;  %3108 = vmatpush3.msra.mxu0 %v3841_v59 }
 0x88c   :  { %3099 = vmatpush3.msra.mxu1 %v3829_v55  ;;  %3109 = vmatprep.subr.mxu0 %v3637_v0 }
 0x88d   :  { %3100 = vmatprep.subr.mxu1 %v3637_v0  ;;  %3110 = vmatpush3.msra.mxu0 %v3846_v60 }
 0x88e   :  { %3101 = vmatpush3.msra.mxu1 %v3833_v56  ;;  %3111 = vmatprep.subr.mxu0 %v3637_v0 }
 0x88f   :  { %3102 = vmatprep.subr.mxu1 %v3637_v0  ;;  %3112 = vmatpush3.msra.mxu0 %v3852_v62 }
 0x890   :  { %3103 = vmatpush3.msra.mxu1 %v3837_v57  ;;  %3113 = vmatprep.subr.mxu0 %v3637_v0 }
 0x891   :  { %3104 = vmatprep.mubr.msk.f32.mxu1 %vm3638_vm0, %v3637_v0  ;;  %3114 = vmatpush3.msra.mxu0 %v3857_v63 }
 0x892   :  { %3115 = vmatprep.mubr.msk.f32.mxu0 %vm3638_vm0, %v3637_v0  ;;  %3118 = vmatprep.subr.mxu1 %v3637_v0 }
 0x893   :  { %3129 = vmatprep.subr.mxu0 %v3637_v0 }
 0x942   :  { %v1017_v46 = vpop.f32.mrf.mxu0 }
 0x944   :  { %v3073_v47 = vpop.f32.mrf.mxu0 }
 0x948   :  { %v1092_v48 = vpop.f32.mrf.mxu1 }
 0x949   :  { %v1093_v49 = vadd.f32 %v1092_v48, %v1017_v46 }
 0x94a   :  { %v3084_v50 = vpop.f32.mrf.mxu1  ;;  %v1192_v51 = vpop.f32.mrf.mxu0 }
 0x94b   :  { %v1096_v52 = vadd.f32 %v3889_v6, %v1093_v49  ;;  %v1196_v53 = vadd.f32 %v1192_v51, %v3809_v27 }
 0x94c   :  { %v3095_v58 = vpop.f32.mrf.mxu0 }
 0x94d   :  { %3324 = vtanh.f32 %v1096_v52  ;;  %v2767_v2 = vmul.f32 -1.442695, %v1096_v52  ;;  %v2769_v3 = vmul.f32 -1.442695, %v1196_v53 }
 0x94e   :  { %3326 = vtanh.f32 %v1196_v53 }
 0x94f   :  { %3328 = vpow2.f32 %v2767_v2 }
 0x950   :  { %3330 = vpow2.f32 %v2769_v3 }
 0x95a   :  { %v3325_v61 = vpop.eup %3324 }
 0x95b   :  { %v3327_v1 = vpop.eup %3326  ;;  %1106 = vrot.lane.b32.xlu0 %v3325_v61, %s3639_s4 }
 0x95c   :  { %1206 = vrot.lane.b32.xlu1 %v3327_v1, %s3639_s4  ;;  %v3329_v4 = vpop.eup %3328 }
 0x95d   :  { %v3331_v5 = vpop.eup %3330  ;;  %v1100_v7 = vadd.f32 1.0, %v3329_v4 }
 0x95e   :  { %v1200_v8 = vadd.f32 1.0, %v3331_v5 }
 0x95f   :  { %3332 = vrcp.f32 %v1100_v7 }
 0x960   :  { %3334 = vrcp.f32 %v1200_v8 }
 0x96c   :  { %v3333_v27 = vpop.eup %3332 }
 0x96d   :  { %v3335_v10 = vpop.eup %3334  ;;  %v1104_v18 = vmul.f32 %v3333_v27, %v3950_v30 }
 0x96e   :  { %v1204_v20 = vmul.f32 %v3335_v10, %v3954_v36 }
 0x9cd   :  { %v1107_v9 = vpop.permute.xlu0 %1106 }
 0x9ce   :  { %v1109_v12 = vmul.f32 %v3333_v27, %v1107_v9  ;;  %v1207_v14 = vpop.permute.xlu1 %1206 }
 0x9cf   :  { %v1209_v15 = vmul.f32 %v3335_v10, %v1207_v14 }
 0x9d0   :  { %1111 = vrot.lane.b32.xlu0 %v1109_v12, %s3639_s4 }
 0x9d1   :  { %1211 = vrot.lane.b32.xlu1 %v1209_v15, %s3639_s4 }
 0xa42   :  { %v1112_v19 = vpop.permute.xlu0 %1111 }
 0xa43   :  { %v4003_v21 = vadd.f32 %v1112_v19, %v1104_v18  ;;  %v1212_v29 = vpop.permute.xlu1 %1211 }
 0xa44   :  { %v4005_v22 = vadd.f32 %v1212_v29, %v1204_v20 }
 0xa45   :  { %3336 = vtanh.f32 %v4003_v21 }
 0xa46   :  { %3338 = vtanh.f32 %v4005_v22 }
 0xa52   :  { %v3337_v23 = vpop.eup %3336 }
 0xa53   :  { %v3339_v24 = vpop.eup %3338  ;;  %1117 = vrot.lane.b32.xlu0 %v3337_v23, %s3639_s4 }
 0xa54   :  { %1217 = vrot.lane.b32.xlu1 %v3339_v24, %s3639_s4 }
 0xac5   :  { %v1118_v25 = vpop.permute.xlu0 %1117 }
 0xac6   :  { %v1120_v26 = vmul.f32 %v3333_v27, %v1118_v25  ;;  %v1218_v28 = vpop.permute.xlu1 %1217 }
 0xac7   :  { %v1220_v30 = vmul.f32 %v3335_v10, %v1218_v28 }
 0xac8   :  { %1122 = vrot.lane.b32.xlu0 %v1120_v26, %s3640_s1 }
 0xac9   :  { %1294 = vrot.lane.b32.xlu1 %v1220_v30, %s3640_s1 }
 0xb3a   :  { %v1123_v32 = vpop.permute.xlu0 %1122 }
 0xb3b   :  { %1125 = vst.msk [vmem:[#allocation2 + $0x10] sm:$0xff] %vm291_vm2, %v1123_v32  ;;  %v1295_v34 = vpop.permute.xlu1 %1294  ;;  %3105 = vmatmul.mubr.msk.f32.vlgmr.msra.gmra.mxu1 %vm291_vm2, %v1123_v32 }
 0xb3c   :  { %3116 = vmatmul.mubr.msk.f32.vlgmr.msra.gmra.mxu0 %vm291_vm2, %v1295_v34  ;;  %3119 = vmatpush3.msra.mxu1 %v3749_v11 }
 0xb3d   :  { %3120 = vmatprep.subr.mxu1 %v3637_v0  ;;  %3126 = vmatprep.mubr.msk.f32.mxu1 %vm3638_vm0, %v3637_v0 }
 0xb3e   :  { %3121 = vmatpush3.msra.mxu1 %v3756_v13  ;;  %3130 = vmatpush3.msra.mxu0 %v3827_v54 }
 0xb3f   :  { %3122 = vmatprep.subr.mxu1 %v3637_v0  ;;  %3131 = vmatprep.subr.mxu0 %v3637_v0 }
 0xb40   :  { %3123 = vmatpush3.msra.mxu1 %v3767_v16  ;;  %3132 = vmatpush3.msra.mxu0 %v3829_v55 }
 0xb41   :  { %3124 = vmatprep.subr.mxu1 %v3637_v0  ;;  %3133 = vmatprep.subr.mxu0 %v3637_v0 }
 0xb42   :  { %3125 = vmatpush3.msra.mxu1 %v3772_v17  ;;  %3134 = vmatpush3.msra.mxu0 %v3833_v56 }
 0xb43   :  { %3127 = vmatmul.mubr.msk.f32.vlgmr.msra.gmra.mxu1 %vm291_vm2, %v1295_v34  ;;  %3135 = vmatprep.subr.mxu0 %v3637_v0 }
 0xb44   :  { %3140 = vmatprep.subr.mxu1 %v3637_v0  ;;  %3136 = vmatpush3.msra.mxu0 %v3837_v57 }
 0xb45   :  { %3141 = vmatpush3.msra.mxu1 %v3841_v59  ;;  %3137 = vmatprep.mubr.msk.f32.mxu0 %vm3638_vm0, %v3637_v0 }
 0xb46   :  { %3142 = vmatprep.subr.mxu1 %v3637_v0  ;;  %3151 = vmatprep.subr.mxu0 %v3637_v0 }
 0xb47   :  { %3143 = vmatpush3.msra.mxu1 %v3846_v60  ;;  %3148 = vmatprep.mubr.msk.f32.mxu1 %vm3638_vm0, %v3637_v0 }
 0xb48   :  { %3144 = vmatprep.subr.mxu1 %v3637_v0 }
 0xb49   :  { %3145 = vmatpush3.msra.mxu1 %v3852_v62 }
 0xb4a   :  { %3146 = vmatprep.subr.mxu1 %v3637_v0 }
 0xb4b   :  { %3147 = vmatpush3.msra.mxu1 %v3857_v63 }
 0xb4c   :  { %3162 = vmatprep.subr.mxu1 %v3637_v0 }
 0xbfb   :  { %v1289_v36 = vpop.f32.mrf.mxu1 }
 0xbfc   :  { %v1364_v37 = vpop.f32.mrf.mxu0 }
 0xbfd   :  { %v1365_v39 = vadd.f32 %v1364_v37, %v1289_v36  ;;  %v3106_v40 = vpop.f32.mrf.mxu1 }
 0xbfe   :  { %v3117_v41 = vpop.f32.mrf.mxu0 }
 0xbff   :  { %v1368_v42 = vadd.f32 %v3889_v6, %v1365_v39 }
 0xc01   :  { %3340 = vtanh.f32 %v1368_v42  ;;  %v2772_v48 = vmul.f32 -1.442695, %v1368_v42 }
 0xc03   :  { %v1464_v44 = vpop.f32.mrf.mxu1 }
 0xc04   :  { %v1468_v43 = vadd.f32 %v1464_v44, %v3815_v33 }
 0xc05   :  { %v3128_v45 = vpop.f32.mrf.mxu1 }
 0xc06   :  { %3342 = vtanh.f32 %v1468_v43  ;;  %v2774_v49 = vmul.f32 -1.442695, %v1468_v43 }
 0xc07   :  { %3344 = vpow2.f32 %v2772_v48 }
 0xc08   :  { %3346 = vpow2.f32 %v2774_v49 }
 0xc0e   :  { %v3341_v46 = vpop.eup %3340 }
 0xc0f   :  { %1378 = vrot.lane.b32.xlu0 %v3341_v46, %s3639_s4 }
 0xc13   :  { %v3343_v47 = vpop.eup %3342 }
 0xc14   :  { %1478 = vrot.lane.b32.xlu1 %v3343_v47, %s3639_s4  ;;  %v3345_v50 = vpop.eup %3344 }
 0xc15   :  { %v1372_v51 = vadd.f32 1.0, %v3345_v50  ;;  %v3347_v52 = vpop.eup %3346 }
 0xc16   :  { %v1472_v53 = vadd.f32 1.0, %v3347_v52 }
 0xc17   :  { %3348 = vrcp.f32 %v1372_v51 }
 0xc18   :  { %3350 = vrcp.f32 %v1472_v53 }
 0xc24   :  { %v3349_v58 = vpop.eup %3348 }
 0xc25   :  { %v3351_v1 = vpop.eup %3350  ;;  %v1376_v4 = vmul.f32 %v3349_v58, %v4003_v21 }
 0xc26   :  { %v1476_v8 = vmul.f32 %v3351_v1, %v4005_v22 }
 0xc81   :  { %v1379_v33 = vpop.permute.xlu0 %1378 }
 0xc82   :  { %v1381_v61 = vmul.f32 %v3349_v58, %v1379_v33 }
 0xc84   :  { %1383 = vrot.lane.b32.xlu0 %v1381_v61, %s3639_s4 }
 0xc86   :  { %v1479_v2 = vpop.permute.xlu1 %1478 }
 0xc87   :  { %v1481_v3 = vmul.f32 %v3351_v1, %v1479_v2 }
 0xc89   :  { %1483 = vrot.lane.b32.xlu1 %v1481_v3, %s3639_s4  ;;  %v4120_v3 = vld [vmem:[#allocation8 + $0x18] sm:$0xff] }
 0xcf6   :  { %v1384_v5 = vpop.permute.xlu0 %1383 }
 0xcf7   :  { %v4054_v7 = vadd.f32 %v1384_v5, %v1376_v4  ;;  %v4126_v4 = vld [vmem:[#allocation8 + $0x10] sm:$0xff]  ;;  %v4132_v5 = vld [vmem:[#allocation8 + $0x8] sm:$0xff] }
 0xcf9   :  { %3352 = vtanh.f32 %v4054_v7 }
 0xcfb   :  { %v1484_v27 = vpop.permute.xlu1 %1483 }
 0xcfc   :  { %v4058_v9 = vadd.f32 %v1484_v27, %v1476_v8 }
 0xcfe   :  { %3354 = vtanh.f32 %v4058_v9 }
 0xd06   :  { %v3353_v10 = vpop.eup %3352 }
 0xd07   :  { %1389 = vrot.lane.b32.xlu0 %v3353_v10, %s3639_s4 }
 0xd0b   :  { %v3355_v12 = vpop.eup %3354 }
 0xd0c   :  { %1489 = vrot.lane.b32.xlu1 %v3355_v12, %s3639_s4 }
 0xd79   :  { %v1390_v14 = vpop.permute.xlu0 %1389 }
 0xd7a   :  { %v1392_v15 = vmul.f32 %v3349_v58, %v1390_v14 }
 0xd7c   :  { %1394 = vrot.lane.b32.xlu0 %v1392_v15, %s3640_s1 }
 0xd7e   :  { %v1490_v18 = vpop.permute.xlu1 %1489 }
 0xd7f   :  { %v1492_v19 = vmul.f32 %v3351_v1, %v1490_v18 }
 0xd81   :  { %1566 = vrot.lane.b32.xlu1 %v1492_v19, %s3640_s1 }
 0xdee   :  { %v1395_v20 = vpop.permute.xlu0 %1394 }
 0xdef   :  { %1397 = vst.msk [vmem:[#allocation2 + $0x18] sm:$0xff] %vm291_vm2, %v1395_v20  ;;  %3138 = vmatmul.mubr.msk.f32.vlgmr.msra.gmra.mxu0 %vm291_vm2, %v1395_v20 }
 0xdf0   :  { %3152 = vmatpush3.msra.mxu0 %v3749_v11  ;;  %3159 = vmatprep.mubr.msk.f32.mxu0 %vm3638_vm0, %v3637_v0 }
 0xdf1   :  { %3153 = vmatprep.subr.mxu0 %v3637_v0 }
 0xdf2   :  { %3154 = vmatpush3.msra.mxu0 %v3756_v13 }
 0xdf3   :  { %3155 = vmatprep.subr.mxu0 %v3637_v0  ;;  %v1567_v21 = vpop.permute.xlu1 %1566 }
 0xdf4   :  { %3156 = vmatpush3.msra.mxu0 %v3767_v16  ;;  %3149 = vmatmul.mubr.msk.f32.vlgmr.msra.gmra.mxu1 %vm291_vm2, %v1567_v21 }
 0xdf5   :  { %3157 = vmatprep.subr.mxu0 %v3637_v0  ;;  %3163 = vmatpush3.msra.mxu1 %v3827_v54 }
 0xdf6   :  { %3158 = vmatpush3.msra.mxu0 %v3772_v17  ;;  %3164 = vmatprep.subr.mxu1 %v3637_v0 }
 0xdf7   :  { %3160 = vmatmul.mubr.msk.f32.vlgmr.msra.gmra.mxu0 %vm291_vm2, %v1567_v21  ;;  %3173 = vmatprep.subr.mxu0 %v3637_v0 }
 0xdf8   :  { %3174 = vmatpush3.msra.mxu0 %v3841_v59  ;;  %3165 = vmatpush3.msra.mxu1 %v3829_v55 }
 0xdf9   :  { %3175 = vmatprep.subr.mxu0 %v3637_v0  ;;  %3166 = vmatprep.subr.mxu1 %v3637_v0 }
 0xdfa   :  { %3176 = vmatpush3.msra.mxu0 %v3846_v60  ;;  %3167 = vmatpush3.msra.mxu1 %v3833_v56 }
 0xdfb   :  { %3177 = vmatprep.subr.mxu0 %v3637_v0  ;;  %3168 = vmatprep.subr.mxu1 %v3637_v0 }
 0xdfc   :  { %3178 = vmatpush3.msra.mxu0 %v3852_v62  ;;  %3169 = vmatpush3.msra.mxu1 %v3837_v57 }
 0xdfd   :  { %3179 = vmatprep.subr.mxu0 %v3637_v0  ;;  %3170 = vmatprep.mubr.msk.f32.mxu1 %vm3638_vm0, %v3637_v0 }
 0xdfe   :  { %3180 = vmatpush3.msra.mxu0 %v3857_v63  ;;  %3181 = vmatprep.mubr.msk.f32.mxu0 %vm3638_vm0, %v3637_v0 }
 0xdff   :  { %3184 = vmatprep.subr.mxu1 %v3637_v0  ;;  %3195 = vmatprep.subr.mxu0 %v3637_v0 }
 0xeaf   :  { %v1561_v11 = vpop.f32.mrf.mxu0 }
 0xeb1   :  { %v3139_v13 = vpop.f32.mrf.mxu0 }
 0xeb4   :  { %v1636_v16 = vpop.f32.mrf.mxu1 }
 0xeb5   :  { %v1637_v17 = vadd.f32 %v1636_v16, %v1561_v11 }
 0xeb6   :  { %v3150_v29 = vpop.f32.mrf.mxu1 }
 0xeb7   :  { %v1640_v22 = vadd.f32 %v3889_v6, %v1637_v17  ;;  %v1736_v23 = vpop.f32.mrf.mxu0 }
 0xeb8   :  { %v1740_v24 = vadd.f32 %v1736_v23, %v3813_v31 }
 0xeb9   :  { %3356 = vtanh.f32 %v1640_v22  ;;  %v3161_v25 = vpop.f32.mrf.mxu0  ;;  %v2777_v30 = vmul.f32 -1.442695, %v1640_v22 }
 0xeba   :  { %3358 = vtanh.f32 %v1740_v24  ;;  %v2779_v32 = vmul.f32 -1.442695, %v1740_v24 }
 0xebb   :  { %3360 = vpow2.f32 %v2777_v30 }
 0xebc   :  { %3362 = vpow2.f32 %v2779_v32 }
 0xec6   :  { %v3357_v26 = vpop.eup %3356 }
 0xec7   :  { %v3359_v28 = vpop.eup %3358  ;;  %1650 = vrot.lane.b32.xlu0 %v3357_v26, %s3639_s4 }
 0xec8   :  { %1750 = vrot.lane.b32.xlu1 %v3359_v28, %s3639_s4  ;;  %v3361_v34 = vpop.eup %3360 }
 0xec9   :  { %v3363_v36 = vpop.eup %3362  ;;  %v1644_v37 = vadd.f32 1.0, %v3361_v34 }
 0xeca   :  { %v1744_v39 = vadd.f32 1.0, %v3363_v36 }
 0xecb   :  { %3364 = vrcp.f32 %v1644_v37 }
 0xecc   :  { %3366 = vrcp.f32 %v1744_v39 }
 0xed8   :  { %v3365_v31 = vpop.eup %3364 }
 0xed9   :  { %v3367_v41 = vpop.eup %3366  ;;  %v1648_v45 = vmul.f32 %v3365_v31, %v4054_v7  ;;  %v4138_v7 = vld [vmem:[#allocation8] sm:$0xff] }
 0xeda   :  { %v1748_v47 = vmul.f32 %v3367_v41, %v4058_v9 }
 0xf39   :  { %v1651_v40 = vpop.permute.xlu0 %1650 }
 0xf3a   :  { %v1653_v42 = vmul.f32 %v3365_v31, %v1651_v40  ;;  %v1751_v44 = vpop.permute.xlu1 %1750  ;;  %v3449_v40 = vld [vmem:[#allocation9 + $0x18] sm:$0xff] }
 0xf3b   :  { %v1753_v43 = vmul.f32 %v3367_v41, %v1751_v44  ;;  %v3452_v44 = vld [vmem:[#allocation11 + $0x8] sm:$0xff] }
 0xf3c   :  { %1655 = vrot.lane.b32.xlu0 %v1653_v42, %s3639_s4  ;;  %v3451_v42 = vld [vmem:[#allocation9 + $0x10] sm:$0xff] }
 0xf3d   :  { %1755 = vrot.lane.b32.xlu1 %v1753_v43, %s3639_s4  ;;  %v3453_v43 = vld [vmem:[#allocation9 + $0x8] sm:$0xff] }
 0xfae   :  { %v1656_v46 = vpop.permute.xlu0 %1655 }
 0xfaf   :  { %v4107_v48 = vadd.f32 %v1656_v46, %v1648_v45  ;;  %v1756_v49 = vpop.permute.xlu1 %1755  ;;  %v3454_v45 = vld [vmem:[#allocation11] sm:$0xff] }
 0xfb0   :  { %v4109_v50 = vadd.f32 %v1756_v49, %v1748_v47  ;;  %v3455_v46 = vld [vmem:[#allocation9] sm:$0xff] }
 0xfb1   :  { %3368 = vtanh.f32 %v4107_v48 }
 0xfb2   :  { %3370 = vtanh.f32 %v4109_v50 }
 0xfbe   :  { %v3369_v51 = vpop.eup %3368 }
 0xfbf   :  { %v3371_v52 = vpop.eup %3370  ;;  %1661 = vrot.lane.b32.xlu0 %v3369_v51, %s3639_s4 }
 0xfc0   :  { %1761 = vrot.lane.b32.xlu1 %v3371_v52, %s3639_s4 }
0x1031   :  { %v1662_v53 = vpop.permute.xlu0 %1661 }
0x1032   :  { %v1664_v58 = vmul.f32 %v3365_v31, %v1662_v53  ;;  %v1762_v33 = vpop.permute.xlu1 %1761  ;;  %v3448_v31 = vld [vmem:[#allocation11 + $0x18] sm:$0xff] }
0x1033   :  { %v1764_v61 = vmul.f32 %v3367_v41, %v1762_v33  ;;  %v3450_v41 = vld [vmem:[#allocation11 + $0x10] sm:$0xff] }
0x1034   :  { %1666 = vrot.lane.b32.xlu0 %v1664_v58, %s3640_s1 }
0x1035   :  { %1838 = vrot.lane.b32.xlu1 %v1764_v61, %s3640_s1 }
0x10a6   :  { %v1667_v1 = vpop.permute.xlu0 %1666 }
0x10a7   :  { %1669 = vst.msk [vmem:[#allocation2 + $0x20] sm:$0xff] %vm291_vm2, %v1667_v1  ;;  %v1839_v2 = vpop.permute.xlu1 %1838  ;;  %3171 = vmatmul.mubr.msk.f32.vlgmr.msra.gmra.mxu1 %vm291_vm2, %v1667_v1 }
0x10a8   :  { %3182 = vmatmul.mubr.msk.f32.vlgmr.msra.gmra.mxu0 %vm291_vm2, %v1839_v2  ;;  %3185 = vmatpush3.msra.mxu1 %v4120_v3 }
0x10a9   :  { %3186 = vmatprep.subr.mxu1 %v3637_v0  ;;  %3192 = vmatprep.mubr.msk.f32.mxu1 %vm3638_vm0, %v3637_v0 }
0x10aa   :  { %3187 = vmatpush3.msra.mxu1 %v4126_v4  ;;  %3196 = vmatpush3.msra.mxu0 %v3827_v54 }
0x10ab   :  { %3188 = vmatprep.subr.mxu1 %v3637_v0  ;;  %3197 = vmatprep.subr.mxu0 %v3637_v0 }
0x10ac   :  { %3189 = vmatpush3.msra.mxu1 %v4132_v5  ;;  %3198 = vmatpush3.msra.mxu0 %v3829_v55 }
0x10ad   :  { %3190 = vmatprep.subr.mxu1 %v3637_v0  ;;  %3199 = vmatprep.subr.mxu0 %v3637_v0 }
0x10ae   :  { %3191 = vmatpush3.msra.mxu1 %v4138_v7  ;;  %3200 = vmatpush3.msra.mxu0 %v3833_v56 }
0x10af   :  { %3193 = vmatmul.mubr.msk.f32.vlgmr.msra.gmra.mxu1 %vm291_vm2, %v1839_v2  ;;  %3201 = vmatprep.subr.mxu0 %v3637_v0 }
0x10b0   :  { %3206 = vmatprep.subr.mxu1 %v3637_v0  ;;  %3202 = vmatpush3.msra.mxu0 %v3837_v57 }
0x10b1   :  { %3207 = vmatpush3.msra.mxu1 %v3841_v59  ;;  %3203 = vmatprep.mubr.msk.f32.mxu0 %vm3638_vm0, %v3637_v0 }
0x10b2   :  { %3208 = vmatprep.subr.mxu1 %v3637_v0  ;;  %3217 = vmatprep.subr.mxu0 %v3637_v0 }
0x10b3   :  { %3209 = vmatpush3.msra.mxu1 %v3846_v60  ;;  %3214 = vmatprep.mubr.msk.f32.mxu1 %vm3638_vm0, %v3637_v0 }
0x10b4   :  { %3210 = vmatprep.subr.mxu1 %v3637_v0 }
0x10b5   :  { %3211 = vmatpush3.msra.mxu1 %v3852_v62 }
0x10b6   :  { %3212 = vmatprep.subr.mxu1 %v3637_v0 }
0x10b7   :  { %3213 = vmatpush3.msra.mxu1 %v3857_v63 }
0x10b8   :  { %3228 = vmatprep.subr.mxu1 %v3637_v0 }
0x1167   :  { %v1833_v54 = vpop.f32.mrf.mxu1 }
0x1168   :  { %v1908_v55 = vpop.f32.mrf.mxu0 }
0x1169   :  { %v1909_v56 = vadd.f32 %v1908_v55, %v1833_v54  ;;  %v3172_v57 = vpop.f32.mrf.mxu1 }
0x116a   :  { %v3183_v59 = vpop.f32.mrf.mxu0 }
0x116b   :  { %v1912_v60 = vadd.f32 %v3889_v6, %v1909_v56 }
0x116d   :  { %3372 = vtanh.f32 %v1912_v60  ;;  %v2782_v63 = vmul.f32 -1.442695, %v1912_v60 }
0x116f   :  { %v2008_v8 = vpop.f32.mrf.mxu1 }
0x1170   :  { %v2012_v27 = vadd.f32 %v2008_v8, %v3819_v38 }
0x1171   :  { %v3194_v9 = vpop.f32.mrf.mxu1 }
0x1172   :  { %3374 = vtanh.f32 %v2012_v27  ;;  %v2784_v12 = vmul.f32 -1.442695, %v2012_v27 }
0x1173   :  { %3376 = vpow2.f32 %v2782_v63 }
0x1174   :  { %3378 = vpow2.f32 %v2784_v12 }
0x117a   :  { %v3373_v62 = vpop.eup %3372 }
0x117b   :  { %1922 = vrot.lane.b32.xlu0 %v3373_v62, %s3639_s4 }
0x117f   :  { %v3375_v10 = vpop.eup %3374 }
0x1180   :  { %2022 = vrot.lane.b32.xlu1 %v3375_v10, %s3639_s4  ;;  %v3377_v14 = vpop.eup %3376  ;;  %v2497_v10 = vld [vmem:[#allocation12 + $0x18] sm:$0xff] }
0x1181   :  { %v1916_v15 = vadd.f32 1.0, %v3377_v14  ;;  %v3379_v18 = vpop.eup %3378 }
0x1182   :  { %v2016_v19 = vadd.f32 1.0, %v3379_v18 }
0x1183   :  { %3380 = vrcp.f32 %v1916_v15 }
0x1184   :  { %3382 = vrcp.f32 %v2016_v19 }
0x1190   :  { %v3381_v20 = vpop.eup %3380 }
0x1191   :  { %v3383_v11 = vpop.eup %3382  ;;  %v1920_v17 = vmul.f32 %v3381_v20, %v4107_v48 }
0x1192   :  { %v2020_v23 = vmul.f32 %v3383_v11, %v4109_v50 }
0x11ed   :  { %v1923_v38 = vpop.permute.xlu0 %1922 }
0x11ee   :  { %v1925_v21 = vmul.f32 %v3381_v20, %v1923_v38  ;;  %v2496_v38 = vld [vmem:[#allocation12 + $0x10] sm:$0xff] }
0x11f0   :  { %1927 = vrot.lane.b32.xlu0 %v1925_v21, %s3639_s4 }
0x11f2   :  { %v2023_v13 = vpop.permute.xlu1 %2022 }
0x11f3   :  { %v2025_v16 = vmul.f32 %v3383_v11, %v2023_v13  ;;  %v2495_v13 = vld [vmem:[#allocation12 + $0x8] sm:$0xff] }
0x11f5   :  { %2027 = vrot.lane.b32.xlu1 %v2025_v16, %s3639_s4  ;;  %v2494_v16 = vld [vmem:[#allocation12] sm:$0xff] }
0x1262   :  { %v1928_v29 = vpop.permute.xlu0 %1927 }
0x1263   :  { %v4166_v22 = vadd.f32 %v1928_v29, %v1920_v17  ;;  %v2487_v17 = vld [vmem:[#allocation2 + $0x8] sm:$0xff]  ;;  %v2488_v29 = vld [vmem:[#allocation2 + $0x10] sm:$0xff] }
0x1265   :  { %3384 = vtanh.f32 %v4166_v22 }
0x1267   :  { %v2028_v24 = vpop.permute.xlu1 %2027 }
0x1268   :  { %v4170_v25 = vadd.f32 %v2028_v24, %v2020_v23  ;;  %v2490_v23 = vld [vmem:[#allocation2 + $0x20] sm:$0xff] }
0x126a   :  { %3386 = vtanh.f32 %v4170_v25 }
0x1272   :  { %v3385_v26 = vpop.eup %3384 }
0x1273   :  { %1933 = vrot.lane.b32.xlu0 %v3385_v26, %s3639_s4 }
0x1277   :  { %v3387_v28 = vpop.eup %3386 }
0x1278   :  { %2033 = vrot.lane.b32.xlu1 %v3387_v28, %s3639_s4 }
0x12e5   :  { %v1934_v30 = vpop.permute.xlu0 %1933 }
0x12e6   :  { %v1936_v32 = vmul.f32 %v3381_v20, %v1934_v30 }
0x12e8   :  { %1938 = vrot.lane.b32.xlu0 %v1936_v32, %s3640_s1 }
0x12ea   :  { %v2034_v34 = vpop.permute.xlu1 %2033 }
0x12eb   :  { %v2036_v36 = vmul.f32 %v3383_v11, %v2034_v34  ;;  %v2486_v11 = vld [vmem:[#allocation2] sm:$0xff] }
0x12ed   :  { %2110 = vrot.lane.b32.xlu1 %v2036_v36, %s3640_s1  ;;  %v3456_v36 = vld [vmem:[%s4280_s7] ss:$0 sm:$0xff]  ;;  %s3641_s7 = smov [#allocation15]  }
0x135a   :  { %v1939_v37 = vpop.permute.xlu0 %1938 }
0x135b   :  { %1941 = vst.msk [vmem:[#allocation2 + $0x28] sm:$0xff] %vm291_vm2, %v1939_v37  ;;  %3204 = vmatmul.mubr.msk.f32.vlgmr.msra.gmra.mxu0 %vm291_vm2, %v1939_v37 }
0x135c   :  { %3218 = vmatpush3.msra.mxu0 %v4120_v3  ;;  %3225 = vmatprep.mubr.msk.f32.mxu0 %vm3638_vm0, %v3637_v0 }
0x135d   :  { %3219 = vmatprep.subr.mxu0 %v3637_v0 }
0x135e   :  { %3220 = vmatpush3.msra.mxu0 %v4126_v4 }
0x135f   :  { %3221 = vmatprep.subr.mxu0 %v3637_v0  ;;  %v2111_v39 = vpop.permute.xlu1 %2110 }
0x1360   :  { %3222 = vmatpush3.msra.mxu0 %v4132_v5  ;;  %3215 = vmatmul.mubr.msk.f32.vlgmr.msra.gmra.mxu1 %vm291_vm2, %v2111_v39 }
0x1361   :  { %3223 = vmatprep.subr.mxu0 %v3637_v0  ;;  %3229 = vmatpush3.msra.mxu1 %v3448_v31 }
0x1362   :  { %3224 = vmatpush3.msra.mxu0 %v4138_v7  ;;  %3230 = vmatprep.subr.mxu1 %v3637_v0  ;;  %v2491_v24 = vld [vmem:[#allocation2 + $0x28] sm:$0xff] }
0x1363   :  { %3226 = vmatmul.mubr.msk.f32.vlgmr.msra.gmra.mxu0 %vm291_vm2, %v2111_v39  ;;  %3239 = vmatprep.subr.mxu0 %v3637_v0  ;;  %v4236_v39 = vld [vmem:[%s4282_s9] ss:$0 sm:$0xff]  ;;  %s2724_s9 = sshll.u32 %s3641_s7, 4  ;;  %s2725_s9 = int_to_ptr.vmem [resolvable:$true] %s2724_s9 }
0x1364   :  { %3240 = vmatpush3.msra.mxu0 %v3449_v40  ;;  %3231 = vmatpush3.msra.mxu1 %v3450_v41  ;;  %s3577_s8 = scalar_lea.vmem %s2725_s9, 512  ;;  %p3582_p3 = scmp.lt.s32.totalorder %s2725_s9, %s2725_s9 }
0x1365   :  { %3241 = vmatprep.subr.mxu0 %v3637_v0  ;;  %3232 = vmatprep.subr.mxu1 %v3637_v0  ;;  %p3578_p2 = scmp.ne.s32.totalorder %s2725_s9, %s3577_s8  ;;  %p3583_p4 = scmp.lt.s32.totalorder %s3577_s8, %s3577_s8 }
0x1366   :  { %3242 = vmatpush3.msra.mxu0 %v3451_v42  ;;  %3233 = vmatpush3.msra.mxu1 %v3452_v44 }
0x1367   :  { %3243 = vmatprep.subr.mxu0 %v3637_v0  ;;  %3234 = vmatprep.subr.mxu1 %v3637_v0  ;;  %p3584_p5 = por %p3583_p4, %p3582_p3 }
0x1368   :  { %3244 = vmatpush3.msra.mxu0 %v3453_v43  ;;  %3235 = vmatpush3.msra.mxu1 %v3454_v45 }
0x1369   :  { %3245 = vmatprep.subr.mxu0 %v3637_v0  ;;  %3236 = vmatprep.mubr.msk.f32.mxu1 %vm3638_vm0, %v3637_v0  ;;  %p3585_p6 = pnand %p3584_p5, %p3578_p2 }
0x136a   :  { %3246 = vmatpush3.msra.mxu0 %v3455_v46  ;;  %3247 = vmatprep.mubr.msk.f32.mxu0 %vm3638_vm0, %v3637_v0 }
0x136b   :  { %3250 = vmatprep.subr.mxu1 %v2497_v10 }
0x141b   :  { %v2105_v47 = vpop.f32.mrf.mxu0 }
0x141d   :  { %v3205_v48 = vpop.f32.mrf.mxu0 }
0x1420   :  { %v2180_v49 = vpop.f32.mrf.mxu1 }
0x1421   :  { %v2181_v50 = vadd.f32 %v2180_v49, %v2105_v47 }
0x1422   :  { %v3216_v51 = vpop.f32.mrf.mxu1 }
0x1423   :  { %v2184_v52 = vadd.f32 %v3889_v6, %v2181_v50  ;;  %v2280_v53 = vpop.f32.mrf.mxu0 }
0x1424   :  { %v2284_v58 = vadd.f32 %v2280_v53, %v3817_v35 }
0x1425   :  { %3388 = vtanh.f32 %v2184_v52  ;;  %v3227_v33 = vpop.f32.mrf.mxu0  ;;  %v2787_v0 = vmul.f32 -1.442695, %v2184_v52 }
0x1426   :  { %3390 = vtanh.f32 %v2284_v58  ;;  %v2789_v2 = vmul.f32 -1.442695, %v2284_v58 }
0x1427   :  { %3392 = vpow2.f32 %v2787_v0 }
0x1428   :  { %3394 = vpow2.f32 %v2789_v2 }
0x1432   :  { %v3389_v61 = vpop.eup %3388 }
0x1433   :  { %v3391_v1 = vpop.eup %3390  ;;  %2194 = vrot.lane.b32.xlu0 %v3389_v61, %s3639_s4 }
0x1434   :  { %2294 = vrot.lane.b32.xlu1 %v3391_v1, %s3639_s4  ;;  %v3393_v3 = vpop.eup %3392 }
0x1435   :  { %v3395_v4 = vpop.eup %3394  ;;  %v2188_v5 = vadd.f32 1.0, %v3393_v3 }
0x1436   :  { %v2288_v6 = vadd.f32 1.0, %v3395_v4 }
0x1437   :  { %3396 = vrcp.f32 %v2188_v5 }
0x1438   :  { %3398 = vrcp.f32 %v2288_v6 }
0x1444   :  { %v3397_v35 = vpop.eup %3396 }
0x1445   :  { %v3399_v54 = vpop.eup %3398  ;;  %v2192_v59 = vmul.f32 %v3397_v35, %v4166_v22  ;;  %v2489_v22 = vld [vmem:[#allocation2 + $0x18] sm:$0xff] }
0x1446   :  { %v2292_v8 = vmul.f32 %v3399_v54, %v4170_v25 }
0x14a5   :  { %v2195_v7 = vpop.permute.xlu0 %2194 }
0x14a6   :  { %v2197_v55 = vmul.f32 %v3397_v35, %v2195_v7  ;;  %v2295_v56 = vpop.permute.xlu1 %2294 }
0x14a7   :  { %v2297_v57 = vmul.f32 %v3399_v54, %v2295_v56 }
0x14a8   :  { %2199 = vrot.lane.b32.xlu0 %v2197_v55, %s3639_s4 }
0x14a9   :  { %2299 = vrot.lane.b32.xlu1 %v2297_v57, %s3639_s4 }
0x151a   :  { %v2200_v60 = vpop.permute.xlu0 %2199 }
0x151b   :  { %v4209_v27 = vadd.f32 %v2200_v60, %v2192_v59  ;;  %v2300_v9 = vpop.permute.xlu1 %2299 }
0x151c   :  { %v4211_v62 = vadd.f32 %v2300_v9, %v2292_v8 }
0x151d   :  { %3400 = vtanh.f32 %v4209_v27 }
0x151e   :  { %3402 = vtanh.f32 %v4211_v62 }
0x152a   :  { %v3401_v63 = vpop.eup %3400 }
0x152b   :  { %v3403_v12 = vpop.eup %3402  ;;  %2205 = vrot.lane.b32.xlu0 %v3401_v63, %s3639_s4 }
0x152c   :  { %2305 = vrot.lane.b32.xlu1 %v3403_v12, %s3639_s4 }
0x159d   :  { %v2206_v14 = vpop.permute.xlu0 %2205 }
0x159e   :  { %v2208_v15 = vmul.f32 %v3397_v35, %v2206_v14  ;;  %v2306_v18 = vpop.permute.xlu1 %2305 }
0x159f   :  { %v2308_v19 = vmul.f32 %v3399_v54, %v2306_v18 }
0x15a0   :  { %2210 = vrot.lane.b32.xlu0 %v2208_v15, %s3640_s1 }
0x15a1   :  { %2382 = vrot.lane.b32.xlu1 %v2308_v19, %s3640_s1 }
0x1612   :  { %v2211_v20 = vpop.permute.xlu0 %2210 }
0x1613   :  { %2213 = vst.msk [vmem:[#allocation2 + $0x30] sm:$0xff] %vm291_vm2, %v2211_v20  ;;  %v2383_v21 = vpop.permute.xlu1 %2382  ;;  %3237 = vmatmul.mubr.msk.f32.vlgmr.msra.gmra.mxu1 %vm291_vm2, %v2211_v20 }
0x1614   :  { %2703 = vst.msk [vmem:[#allocation15] sm:$0xff] %vm291_vm2, %v2383_v21  ;;  %3248 = vmatmul.mubr.msk.f32.vlgmr.msra.gmra.mxu0 %vm291_vm2, %v2383_v21  ;;  %3251 = vmatpush3.msra.mxu1 %v2497_v10 }
0x1615   :  { %3252 = vmatprep.subr.mxu1 %v2496_v38  ;;  %3258 = vmatprep.mubr.msk.f32.mxu1 %vm291_vm2, %v2486_v11 }
0x1616   :  { %3253 = vmatpush3.msra.mxu1 %v2496_v38 }
0x1617   :  { %3254 = vmatprep.subr.mxu1 %v2495_v13 }
0x1618   :  { %3255 = vmatpush3.msra.mxu1 %v2495_v13 }
0x1619   :  { %3256 = vmatprep.subr.mxu1 %v2494_v16 }
0x161a   :  { %3257 = vmatpush3.msra.mxu1 %v2494_v16  ;;  %v2492_v25 = vld [vmem:[#allocation2 + $0x30] sm:$0xff] }
0x161b   :  { %3259 = vmatmul.mubr.msk.f32.vlgmr.msra.gmra.mxu1 %vm291_vm2, %v2487_v17 }
0x161c   :  { %3261 = vmatprep.mubr.msk.f32.mxu1 %vm291_vm2, %v2488_v29 }
0x161f   :  { %3262 = vmatmul.mubr.msk.f32.gmra.mxu1 %vm291_vm2, %v2489_v22 }
0x1620   :  { %3264 = vmatprep.mubr.msk.f32.mxu1 %vm291_vm2, %v2490_v23 }
0x1623   :  { %3265 = vmatmul.mubr.msk.f32.gmra.mxu1 %vm291_vm2, %v2491_v24 }
0x1624   :  { %3267 = vmatprep.mubr.msk.f32.mxu1 %vm291_vm2, %v2492_v25 }
0x16d3   :  { %v2377_v26 = vpop.f32.mrf.mxu1 }
0x16d4   :  { %v2452_v28 = vpop.f32.mrf.mxu0 }
0x16d5   :  { %v2453_v30 = vadd.f32 %v2452_v28, %v2377_v26  ;;  %v3238_v32 = vpop.f32.mrf.mxu1 }
0x16d6   :  { %v3249_v34 = vpop.f32.mrf.mxu0 }
0x16d7   :  { %v2456_v37 = vadd.f32 %v3456_v36, %v2453_v30 }
0x16d9   :  { %3404 = vtanh.f32 %v2456_v37  ;;  %v2792_v12 = vmul.f32 -1.442695, %v2456_v37 }
0x16db   :  { %v3260_v31 = vpop.f32.mrf.mxu1 }
0x16dc   :  { %v2601_v40 = vadd.f32 %v3260_v31, %v4236_v39 }
0x16dd   :  { %v2595_v41 = vpop.f32.mrf.mxu1 }
0x16de   :  { %v2803_v42 = vmul.f32 -1.442695, %v2601_v40  ;;  %v2596_v44 = vadd.f32 %v4236_v39, %v2595_v41 }
0x16df   :  { %v3263_v43 = vpop.f32.mrf.mxu1 }
0x16e0   :  { %3406 = vpow2.f32 %v2803_v42  ;;  %v2802_v45 = vmul.f32 -1.442695, %v2596_v44  ;;  %v2611_v46 = vadd.f32 %v3263_v43, %v4236_v39 }
0x16e1   :  { %v2605_v47 = vpop.f32.mrf.mxu1 }
0x16e2   :  { %3408 = vpow2.f32 %v2802_v45  ;;  %v2805_v48 = vmul.f32 -1.442695, %v2611_v46  ;;  %v2606_v49 = vadd.f32 %v4236_v39, %v2605_v47 }
0x16e3   :  { %v3266_v50 = vpop.f32.mrf.mxu1 }
0x16e4   :  { %3410 = vpow2.f32 %v2805_v48  ;;  %v2804_v51 = vmul.f32 -1.442695, %v2606_v49  ;;  %v2621_v52 = vadd.f32 %v3266_v50, %v4236_v39 }
0x16e5   :  { %v2615_v53 = vpop.f32.mrf.mxu1 }
0x16e6   :  { %v3405_v58 = vpop.eup %3404  ;;  %3412 = vpow2.f32 %v2804_v51  ;;  %v2807_v33 = vmul.f32 -1.442695, %v2621_v52  ;;  %v2616_v61 = vadd.f32 %v4236_v39, %v2615_v53 }
0x16e7   :  { %2466 = vrot.lane.b32.xlu0 %v3405_v58, %s3639_s4 }
0x16e8   :  { %3414 = vpow2.f32 %v2807_v33  ;;  %v2806_v1 = vmul.f32 -1.442695, %v2616_v61 }
0x16ea   :  { %3416 = vpow2.f32 %v2806_v1 }
0x16ed   :  { %v3407_v0 = vpop.eup %3406 }
0x16ee   :  { %v2659_v2 = vadd.f32 1.0, %v3407_v0 }
0x16ef   :  { %v3409_v3 = vpop.eup %3408 }
0x16f0   :  { %3418 = vrcp.f32 %v2659_v2  ;;  %v2658_v4 = vadd.f32 1.0, %v3409_v3 }
0x16f1   :  { %v3411_v5 = vpop.eup %3410 }
0x16f2   :  { %3420 = vrcp.f32 %v2658_v4  ;;  %v2661_v6 = vadd.f32 1.0, %v3411_v5 }
0x16f3   :  { %v3413_v35 = vpop.eup %3412 }
0x16f4   :  { %3422 = vrcp.f32 %v2661_v6  ;;  %v2660_v7 = vadd.f32 1.0, %v3413_v35 }
0x16f5   :  { %v3415_v54 = vpop.eup %3414 }
0x16f6   :  { %3424 = vrcp.f32 %v2660_v7  ;;  %v2663_v55 = vadd.f32 1.0, %v3415_v54 }
0x16f7   :  { %v3417_v56 = vpop.eup %3416 }
0x16f8   :  { %3426 = vrcp.f32 %v2663_v55  ;;  %v2662_v57 = vadd.f32 1.0, %v3417_v56 }
0x16fa   :  { %3428 = vrcp.f32 %v2662_v57 }
0x16fb   :  { %3430 = vpow2.f32 %v2792_v12 }
0x16fd   :  { %v3419_v59 = vpop.eup %3418 }
0x16fe   :  { %2683 = vst [vmem:[#allocation14 + $0x8] sm:$0xff] %v3419_v59 }
0x16ff   :  { %v3421_v60 = vpop.eup %3420 }
0x1700   :  { %2682 = vst [vmem:[#allocation14] sm:$0xff] %v3421_v60 }
0x1701   :  { %v3423_v8 = vpop.eup %3422 }
0x1702   :  { %2685 = vst [vmem:[#allocation14 + $0x18] sm:$0xff] %v3423_v8 }
0x1703   :  { %v3425_v9 = vpop.eup %3424 }
0x1704   :  { %2684 = vst [vmem:[#allocation14 + $0x10] sm:$0xff] %v3425_v9 }
0x1705   :  { %v3427_v10 = vpop.eup %3426 }
0x1706   :  { %2687 = vst [vmem:[#allocation14 + $0x28] sm:$0xff] %v3427_v10 }
0x1707   :  { %v3429_v63 = vpop.eup %3428 }
0x1708   :  { %2686 = vst [vmem:[#allocation14 + $0x20] sm:$0xff] %v3429_v63  ;;  %v3431_v14 = vpop.eup %3430 }
0x1709   :  { %v2460_v15 = vadd.f32 1.0, %v3431_v14 }
0x170b   :  { %3432 = vrcp.f32 %v2460_v15 }
0x1718   :  { %v3433_v18 = vpop.eup %3432 }
0x1719   :  { %v2464_v38 = vmul.f32 %v3433_v18, %v4209_v27 }
0x1759   :  { %v2467_v19 = vpop.permute.xlu0 %2466 }
0x175a   :  { %v2469_v20 = vmul.f32 %v3433_v18, %v2467_v19 }
0x175c   :  { %2471 = vrot.lane.b32.xlu1 %v2469_v20, %s3639_s4 }
0x17ce   :  { %v2472_v21 = vpop.permute.xlu1 %2471 }
0x17cf   :  { %v2474_v11 = vadd.f32 %v2472_v21, %v2464_v38 }
0x17d1   :  { %3434 = vtanh.f32 %v2474_v11 }
0x17de   :  { %v3435_v13 = vpop.eup %3434 }
0x17df   :  { %2477 = vrot.lane.b32.xlu0 %v3435_v13, %s3639_s4 }
0x17e3   :  { %2691 = vrot.lane.b32.xlu0 %v4211_v62, %s3639_s4 }
0x1851   :  { %v2478_v16 = vpop.permute.xlu0 %2477 }
0x1852   :  { %v2480_v17 = vmul.f32 %v3433_v18, %v2478_v16 }
0x1854   :  { %2482 = vrot.lane.b32.xlu1 %v2480_v17, %s3640_s1 }
0x1855   :  { %v2692_v29 = vpop.permute.xlu0 %2691 }
0x1856   :  { %2696 = vrot.lane.b32.xlu0 %v2692_v29, %s3640_s1 }
0x1858   :  { %2694 = vrot.lane.b32.xlu1 %v2474_v11, %s3639_s4 }
0x18c6   :  { %v2483_v22 = vpop.permute.xlu1 %2482 }
0x18c7   :  { %2485 = vst.msk [vmem:[#allocation2 + $0x38] sm:$0xff] %vm291_vm2, %v2483_v22  ;;  %2705 = vst.msk [vmem:[#allocation15 + $0x10] sm:$0xff] %vm291_vm2, %v2483_v22 }
0x18c8   :  { %v2697_v27 = vpop.permute.xlu0 %2696 }
0x18c9   :  { %2704 = vst.msk [vmem:[#allocation15 + $0x8] sm:$0xff] %vm291_vm2, %v2697_v27 }
0x18ca   :  { %v2695_v23 = vpop.permute.xlu1 %2694 }
0x18cb   :  { %2698 = vrot.lane.b32.xlu1 %v2695_v23, %s3640_s1 }
0x18ce   :  { %v2493_v62 = vld [vmem:[#allocation2 + $0x38] sm:$0xff] }
0x18cf   :  { %3268 = vmatmul.mubr.msk.f32.gmra.mxu1 %vm291_vm2, %v2493_v62 }
0x193d   :  { %v2699_v24 = vpop.permute.xlu1 %2698 }
0x193e   :  { %2706 = vst.msk [vmem:[#allocation15 + $0x18] sm:$0xff] %vm291_vm2, %v2699_v24 }
0x193f   :  { %3588 = shalt.err (!%p3585_p6)
}
0x1940   :  { %2730 = dma.vmem_to_hbm [thread:$0]  %s2725_s9, 512, %s4284_s11, [#allocation16], %s3631_s22, %s3631_s22, %s3632_s23  }
0x1941   :  { %s3642_s30 = smov [#allocation14]  }
0x1942   :  { %s2712_s12 = sshll.u32 %s3642_s30, 4  ;;  %s2713_s12 = int_to_ptr.vmem [resolvable:$true] %s2712_s12 }
0x1943   :  { %s3597_s11 = scalar_lea.vmem %s2713_s12, 1024  ;;  %p3602_p8 = scmp.lt.s32.totalorder %s2713_s12, %s2713_s12 }
0x1944   :  { %p3598_p7 = scmp.ne.s32.totalorder %s2713_s12, %s3597_s11  ;;  %p3603_p9 = scmp.lt.s32.totalorder %s3597_s11, %s3597_s11 }
0x1946   :  { %p3604_p10 = por %p3603_p9, %p3602_p8 }
0x1948   :  { %p3605_p11 = pnand %p3604_p10, %p3598_p7 }
0x198f   :  { %v3269_v25 = vpop.f32.mrf.mxu1 }
0x1990   :  { %v2631_v26 = vadd.f32 %v3269_v25, %v4236_v39 }
0x1991   :  { %v2625_v28 = vpop.f32.mrf.mxu1 }
0x1992   :  { %v2809_v30 = vmul.f32 -1.442695, %v2631_v26  ;;  %v2626_v32 = vadd.f32 %v4236_v39, %v2625_v28 }
0x1994   :  { %3436 = vpow2.f32 %v2809_v30  ;;  %v2808_v34 = vmul.f32 -1.442695, %v2626_v32 }
0x1996   :  { %3438 = vpow2.f32 %v2808_v34 }
0x19a1   :  { %v3437_v36 = vpop.eup %3436 }
0x19a2   :  { %v2665_v37 = vadd.f32 1.0, %v3437_v36 }
0x19a3   :  { %v3439_v31 = vpop.eup %3438 }
0x19a4   :  { %3440 = vrcp.f32 %v2665_v37  ;;  %v2664_v40 = vadd.f32 1.0, %v3439_v31 }
0x19a6   :  { %3442 = vrcp.f32 %v2664_v40 }
0x19b1   :  { %v3441_v41 = vpop.eup %3440 }
0x19b2   :  { %2689 = vst [vmem:[#allocation14 + $0x38] sm:$0xff] %v3441_v41 }
0x19b3   :  { %v3443_v42 = vpop.eup %3442 }
0x19b4   :  { %2688 = vst [vmem:[#allocation14 + $0x30] sm:$0xff] %v3443_v42 }
0x19b5   :  { %3608 = shalt.err (!%p3605_p11)
}
0x19b6   :  { %2718 = dma.vmem_to_hbm [thread:$0]  %s2713_s12, 1024, %s4283_s10, [#allocation5], %s3631_s22, %s3631_s22, %s3632_s23  }
0x19b7   :  { %3625 = dma.done.wait [#allocation5], 1024  }
0x19b8   :  { %3626 = vsyncadd [#allocation5], 4294966272 }
0x19b9   :  { %3627 = dma.done.wait [#allocation16], 512  }
0x19ba   :  { %3628 = vsyncadd [#allocation16], 4294966784 }
0x19bb   :  { %2737 = vsyncpa [#allocation4], 1 }
0x19bc   :  { %2738 = vsyncpa [#allocation7], 1 }
0x19bd   :  { %2739 = vsyncpa [#allocation10], 1 }
0x19be   :  { %2740 = vsyncpa [#allocation13], 1 }
0x19bf   :  { %2741 = vsyncpa [#allocation5], 1 }
0x19c0   :  { %2742 = vsyncpa [#allocation16], 1 }

</bundles_post_ra>
